<compile_context>
chip_gen: v7x
topology: tpu7x:2x2x1
jax: 0.10.0
libtpu: 0.0.40
codegen_flags: <defaults>
</compile_context>

<pallas_src>
import functools

import jax
import jax.numpy as jnp
from jax.experimental import pallas as pl
from jax.experimental.pallas import tpu as pltpu


# -----------------------------------------------------------------------------
# Fused Pallas kernel: embeddings-in -> logits-out (minus the embedding gather)
# -----------------------------------------------------------------------------
def make_lstm_stack_kernel(num_layers):
    def kernel(x_ref, vm_ref, oh_ref, *args):
        """Fused bidirectional multi-layer LSTM + cpos gather + fc1.

        x_ref  : [T*Bp, E]  f32  time-major embedded input (row = t*Bp + b)
        vm_ref : [T*Bp, 1]  f32  1.0 where t < length[b] else 0.0
        oh_ref : [Bp, T*Bp] f32  one-hot rows selecting row (cpos[b], b)
        per layer l:
          wih  : [I_l, 8*Hd]  bf16  fused input weights, col = gate*2*Hd + dir*Hd + j
                                    (g-gate columns pre-scaled by 2 for tanh identity)
          whh  : [2*Hd, 8*Hd] f32   block-diagonal recurrent weights (same layout)
          b    : [1, 8*Hd]    f32   b_ih + b_hh (g-gate entries pre-scaled by 2)
        fcw    : [2*Hd, nclasses], fcb: [1, nclasses]
        out    : [Bp, nclasses]
        """
        layer_refs = args[:3 * num_layers]
        fcw_ref, fcb_ref, out_ref = args[3 * num_layers:]

        Bp, TBp = oh_ref.shape
        T = TBp // Bp
        H2 = layer_refs[1].shape[0]        # 2 * Hd (both directions), whh rows
        Hd = H2 // 2
        G = 4 * H2                         # fused gate width (128 for this config)

        vm = vm_ref[...]                                            # loaded once
        # Static masks, hoisted (JAX does not CSE broadcast_in_dim).
        fwd_lanes = jax.lax.broadcasted_iota(jnp.int32, (Bp, H2), 1) < Hd
        fwd_cols = (jax.lax.broadcasted_iota(jnp.int32, (Bp, G), 1) % H2) < Hd

        # Backward-freeze masks depend only on vm -> hoisted above the layer loop.
        upd_masks = []
        for s in range(T):
            t2 = T - 1 - s
            bwd_valid = vm[t2 * Bp:(t2 + 1) * Bp, :] > 0.0          # [Bp, 1]
            upd_masks.append(jnp.logical_or(fwd_lanes, bwd_valid))  # [Bp, H2]

        y = x_ref[...]                                              # layer input
        for layer in range(num_layers):
            wih_ref, whh_ref, b_ref = layer_refs[3 * layer:3 * layer + 3]
            # Hoisted input projection + bias: one big bf16 MXU matmul per layer.
            gx = (jnp.dot(y.astype(jnp.bfloat16), wih_ref[...],
                          preferred_element_type=jnp.float32)
                  + b_ref[...])                                     # [T*Bp, 8*Hd]
            # Per-step fwd/bwd time selection, precomputed (h-independent):
            # fwd gate columns take time s, bwd gate columns take time T-1-s.
            gx_steps = [
                jnp.where(fwd_cols,
                          gx[s * Bp:(s + 1) * Bp, :],
                          gx[(T - 1 - s) * Bp:(T - s) * Bp, :])
                for s in range(T)
            ]
            whh = whh_ref[...]                                      # [2*Hd, 8*Hd]

            h = jnp.zeros((Bp, H2), jnp.float32)                    # [h_fwd | h_bwd]
            c = jnp.zeros((Bp, H2), jnp.float32)
            h_steps = []
            # TODO(synk): hold whh in the MXU staging registers across the
            # unrolled steps via pltpu.matmul_push_rhs/acc_lhs/pop; for now the
            # fully-unrolled loop with a loop-invariant RHS is left to Mosaic.
            for s in range(T):       # fully unrolled; fwd at t=s, bwd at t=T-1-s
                gates = gx_steps[s] + jnp.dot(h, whh,
                                              preferred_element_type=jnp.float32)
                # One EUP push for all four gates (g-gate pre-scaled by 2):
                sg = jax.nn.sigmoid(gates)                          # [Bp, 8*Hd]
                i_g = sg[:, 0 * H2:1 * H2]
                f_g = sg[:, 1 * H2:2 * H2]
                g_t = 2.0 * sg[:, 2 * H2:3 * H2] - 1.0              # tanh via 2*sig(2x)-1
                o_g = sg[:, 3 * H2:4 * H2]
                c_new = f_g * c + i_g * g_t
                # tanh(c_new) via the same identity: second (and last) EUP push.
                h_new = o_g * (2.0 * jax.nn.sigmoid(2.0 * c_new) - 1.0)
                # Backward direction only advances while its time index is valid
                # (zero init + freeze == packed-sequence reverse pass). Forward
                # needs no freeze for the cpos output path (right padding).
                h = jnp.where(upd_masks[s], h_new, h)
                c = jnp.where(upd_masks[s], c_new, c)
                h_steps.append(h_new)

            # Assemble this layer's output entirely in registers: at time t the
            # fwd half comes from step t, the bwd half from step T-1-t. Then
            # pad_packed_sequence zeroing (t >= length) is applied once.
            y = jnp.concatenate(
                [jnp.where(fwd_lanes, h_steps[t], h_steps[T - 1 - t])
                 for t in range(T)], axis=0) * vm                   # [T*Bp, 2*Hd]
            # inter-layer LSTM dropout: identity in eval mode

        # x[row, cpos[row], :] gather expressed as a one-hot matmul, fused with fc1.
        sel = jnp.dot(oh_ref[...], y, preferred_element_type=jnp.float32)  # [Bp, 2*Hd]
        # self.d1 dropout: identity in eval mode
        out_ref[...] = (jnp.dot(sel, fcw_ref[...],
                                preferred_element_type=jnp.float32)
                        + fcb_ref[...])

    return kernel


def run_lstm_stack(x_flat, vm, onehot, layer_weights, fc_w_t, fc_b, num_layers):
    Bp = onehot.shape[0]
    nclasses = fc_w_t.shape[1]

    flat_w = []
    for (wih, whh, b) in layer_weights:
        flat_w += [wih, whh, b]
    n_inputs = 3 + len(flat_w) + 2

    # Everything (<1 MiB total) stays resident in VMEM; gridless single program.
    # TODO(synk): if T / hidden / layers are scaled to production sizes, stream
    # gx and per-layer weights with a grid or pltpu.emit_pipeline (v7x VMEM).
    return pl.pallas_call(
        make_lstm_stack_kernel(num_layers),
        out_shape=jax.ShapeDtypeStruct((Bp, nclasses), jnp.float32),
        in_specs=[pl.BlockSpec(memory_space=pltpu.MemorySpace.VMEM)] * n_inputs,
        out_specs=pl.BlockSpec(memory_space=pltpu.MemorySpace.VMEM),
    )(x_flat, vm, onehot, *flat_w, fc_w_t, fc_b)


# -----------------------------------------------------------------------------
# Weight packing (PyTorch layout -> fused kernel layout) and parameter init
# -----------------------------------------------------------------------------
def pack_bidir_layer(w_ih_f, w_hh_f, b_f, w_ih_b, w_hh_b, b_b):
    """Pack per-direction PyTorch-layout weights into the fused (gate, dir, Hd)
    column layout; W_hh becomes block-diagonal over directions. The g-gate
    (index 2) columns are pre-scaled by 2 so the kernel can compute its tanh as
    2*sigmoid(2x)-1 with the single full-width sigmoid. W_ih is emitted in bf16
    for the hoisted MXU projection."""
    four_h, in_dim = w_ih_f.shape
    Hd = four_h // 4
    H2 = 2 * Hd
    G = 4 * H2
    wih = jnp.zeros((in_dim, G), jnp.float32)
    whh = jnp.zeros((H2, G), jnp.float32)
    bias = jnp.zeros((1, G), jnp.float32)
    for d, (w_ih, w_hh, b) in enumerate(((w_ih_f, w_hh_f, b_f),
                                         (w_ih_b, w_hh_b, b_b))):
        for g in range(4):                      # PyTorch gate order: i, f, g, o
            scale = 2.0 if g == 2 else 1.0      # fold tanh(x) = 2*sigmoid(2x) - 1
            c0 = g * H2 + d * Hd
            wih = wih.at[:, c0:c0 + Hd].set(scale * w_ih[g * Hd:(g + 1) * Hd, :].T)
            whh = whh.at[d * Hd:(d + 1) * Hd, c0:c0 + Hd].set(
                scale * w_hh[g * Hd:(g + 1) * Hd, :].T)
            bias = bias.at[0, c0:c0 + Hd].set(scale * b[g * Hd:(g + 1) * Hd])
    return wih.astype(jnp.bfloat16), whh, bias


def init_params(key, vocab_size, emb_size, input_size, hidden_size,
                num_layers, nclasses, padding_idx):
    h_dir = hidden_size // 2                                     # bidirectional
    keys = iter(jax.random.split(key, 3 + 8 * num_layers))
    emb = jax.random.normal(next(keys), (vocab_size, emb_size), jnp.float32) * 0.1
    emb = emb.at[padding_idx].set(0.0)          # nn.Embedding padding row is zero
    bound = float(1.0 / (h_dir ** 0.5))
    layers = []
    for layer in range(num_layers):
        in_dim = input_size if layer == 0 else hidden_size
        dirs = []
        for _ in range(2):                       # 0 = forward, 1 = backward
            w_ih = jax.random.uniform(next(keys), (4 * h_dir, in_dim),
                                      jnp.float32, -bound, bound)
            w_hh = jax.random.uniform(next(keys), (4 * h_dir, h_dir),
                                      jnp.float32, -bound, bound)
            b_ih = jax.random.uniform(next(keys), (4 * h_dir,),
                                      jnp.float32, -bound, bound)
            b_hh = jax.random.uniform(next(keys), (4 * h_dir,),
                                      jnp.float32, -bound, bound)
            dirs.append((w_ih, w_hh, b_ih + b_hh))
        (wf, hf, bf), (wb, hb, bb) = dirs
        layers.append(pack_bidir_layer(wf, hf, bf, wb, hb, bb))
    fc_bound = float(1.0 / (hidden_size ** 0.5))
    fc_w = jax.random.uniform(next(keys), (nclasses, hidden_size),
                              jnp.float32, -fc_bound, fc_bound)
    fc_b = jax.random.uniform(next(keys), (nclasses,),
                              jnp.float32, -fc_bound, fc_bound)
    return {"embeddings": emb, "layers": layers,
            "fc1_w_t": fc_w.T, "fc1_b": fc_b.reshape(1, -1)}


# -----------------------------------------------------------------------------
# Forward (eval mode): embedding lookup + mask/one-hot prep + one fused kernel
# -----------------------------------------------------------------------------
@functools.partial(jax.jit, static_argnames=("padding_idx", "num_layers"))
def lstm_forward(params, x_ids, cpos, padding_idx, num_layers):
    """Reproduces LSTM.forward(x, cpos, ignore_cpos=False) in eval mode."""
    B, T = x_ids.shape
    # Pad the batch to the sublane width so every per-step tile in the kernel is
    # (8,128)-aligned; padded rows have length 0 and are dropped at the end.
    Bp = ((B + 7) // 8) * 8
    pad = Bp - B
    x_ids_p = jnp.pad(x_ids, ((0, pad), (0, 0)), constant_values=padding_idx)
    cpos_p = jnp.pad(cpos.astype(jnp.int32), (0, pad))

    mask = x_ids_p != padding_idx
    lengths = mask.sum(axis=1).astype(jnp.int32)                 # [Bp]
    x_tm = params["embeddings"][x_ids_p.T]                       # [T, Bp, E]
    x_flat = x_tm.reshape(T * Bp, x_tm.shape[-1])                # row = t*Bp + b
    vm = (jnp.arange(T)[:, None] < lengths[None, :]).astype(jnp.float32)
    vm = vm.reshape(T * Bp, 1)
    onehot = (jnp.arange(T * Bp)[None, :] ==
              (cpos_p * Bp + jnp.arange(Bp))[:, None]
              ).astype(jnp.float32)                              # [Bp, T*Bp]
    # TODO(synk): ignore_cpos=True branch (final hidden-state path) not implemented.
    out = run_lstm_stack(x_flat, vm, onehot, params["layers"],
                         params["fc1_w_t"], params["fc1_b"], num_layers)
    return out[:B]


# -----------------------------------------------------------------------------
if __name__ == "__main__":
    PADDING_IDX = 0
    VOCAB = 20
    EMB = 32           # embedding_size == input_size
    INPUT_SIZE = 32
    HIDDEN = 32        # total hidden size (16 per direction)
    NUM_LAYERS = 2
    NCLASSES = 2
    B, T = 2, 8

    key = jax.random.PRNGKey(0)
    k_params, k_tok = jax.random.split(key)
    params = init_params(k_params, VOCAB, EMB, INPUT_SIZE, HIDDEN,
                         NUM_LAYERS, NCLASSES, PADDING_IDX)

    # Right-padded token ids (padding_idx = 0); lengths = [8, 5].
    tok = jax.random.randint(k_tok, (B, T), 1, VOCAB, dtype=jnp.int32)
    x_ids = tok.at[1, 5:].set(PADDING_IDX)
    cpos = jnp.array([3, 2], dtype=jnp.int32)

    logits = lstm_forward(params, x_ids, cpos, PADDING_IDX, NUM_LAYERS)
    logits = jax.block_until_ready(logits)

    assert logits.shape == (B, NCLASSES), logits.shape
    assert bool(jnp.all(jnp.isfinite(logits)))
    print("KERNEL_OK")
</pallas_src>

<mosaic_0001>
module attributes {stable_mosaic.version = 11 : i64} {
  func.func @kernel(%arg0: memref<64x32xf32, #tpu.memory_space<vmem>>, %arg1: memref<64x1xf32, #tpu.memory_space<vmem>>, %arg2: memref<8x64xf32, #tpu.memory_space<vmem>>, %arg3: memref<32x128xbf16, #tpu.memory_space<vmem>>, %arg4: memref<32x128xf32, #tpu.memory_space<vmem>>, %arg5: memref<1x128xf32, #tpu.memory_space<vmem>>, %arg6: memref<32x128xbf16, #tpu.memory_space<vmem>>, %arg7: memref<32x128xf32, #tpu.memory_space<vmem>>, %arg8: memref<1x128xf32, #tpu.memory_space<vmem>>, %arg9: memref<32x2xf32, #tpu.memory_space<vmem>>, %arg10: memref<1x2xf32, #tpu.memory_space<vmem>>, %arg11: memref<8x2xf32, #tpu.memory_space<vmem>>) attributes {dimension_semantics = [], scalar_prefetch = 0 : i64, scratch_operands = 0 : i64, tpu.core_type = #tpu.core_type<tc>} {
    %c0 = arith.constant 0 : index
    %c0_0 = arith.constant 0 : index
    %0 = vector.load %arg1[%c0, %c0_0] : memref<64x1xf32, #tpu.memory_space<vmem>>, vector<64x1xf32>
    %1 = tpu.iota {dimensions = array<i32: 1>} : vector<8x32xi32>
    %c16_i32 = arith.constant 16 : i32
    %2 = vector.broadcast %c16_i32 : i32 to vector<8x32xi32>
    %3 = arith.cmpi slt, %1, %2 : vector<8x32xi32>
    %4 = tpu.iota {dimensions = array<i32: 1>} : vector<8x128xi32>
    %c32_i32 = arith.constant 32 : i32
    %c0_i32 = arith.constant 0 : i32
    %5 = arith.cmpi eq, %c32_i32, %c0_i32 : i32
    %c1_i32 = arith.constant 1 : i32
    %6 = arith.select %5, %c1_i32, %c32_i32 : i32
    %7 = vector.broadcast %6 : i32 to vector<8x128xi32>
    %8 = arith.remsi %4, %7 : vector<8x128xi32>
    %c0_i32_1 = arith.constant 0 : i32
    %9 = vector.broadcast %c0_i32_1 : i32 to vector<8x128xi32>
    %10 = arith.cmpi ne, %8, %9 : vector<8x128xi32>
    %c0_i32_2 = arith.constant 0 : i32
    %11 = vector.broadcast %c0_i32_2 : i32 to vector<8x128xi32>
    %12 = arith.cmpi slt, %8, %11 : vector<8x128xi32>
    %c0_i32_3 = arith.constant 0 : i32
    %13 = arith.cmpi slt, %6, %c0_i32_3 : i32
    %14 = vector.broadcast %13 : i1 to vector<8x128xi1>
    %15 = vector.broadcast %14 : vector<8x128xi1> to vector<8x128xi1>
    %16 = arith.xori %12, %15 : vector<8x128xi1>
    %17 = arith.andi %16, %10 : vector<8x128xi1>
    %18 = vector.broadcast %6 : i32 to vector<8x128xi32>
    %19 = arith.addi %8, %18 : vector<8x128xi32>
    %20 = arith.select %17, %19, %8 : vector<8x128xi1>, vector<8x128xi32>
    %c16_i32_4 = arith.constant 16 : i32
    %21 = vector.broadcast %c16_i32_4 : i32 to vector<8x128xi32>
    %22 = arith.cmpi slt, %20, %21 : vector<8x128xi32>
    %23 = vector.extract_strided_slice %0 {offsets = [56, 0], sizes = [8, 1], strides = [1, 1]} : vector<64x1xf32> to vector<8x1xf32>
    %cst = arith.constant 0.000000e+00 : f32
    %24 = vector.broadcast %cst : f32 to vector<8x1xf32>
    %25 = arith.cmpf ogt, %23, %24 : vector<8x1xf32>
    %26 = vector.broadcast %25 : vector<8x1xi1> to vector<8x32xi1>
    %27 = arith.ori %3, %26 : vector<8x32xi1>
    %28 = vector.extract_strided_slice %0 {offsets = [48, 0], sizes = [8, 1], strides = [1, 1]} : vector<64x1xf32> to vector<8x1xf32>
    %cst_5 = arith.constant 0.000000e+00 : f32
    %29 = vector.broadcast %cst_5 : f32 to vector<8x1xf32>
    %30 = arith.cmpf ogt, %28, %29 : vector<8x1xf32>
    %31 = vector.broadcast %30 : vector<8x1xi1> to vector<8x32xi1>
    %32 = arith.ori %3, %31 : vector<8x32xi1>
    %33 = vector.extract_strided_slice %0 {offsets = [40, 0], sizes = [8, 1], strides = [1, 1]} : vector<64x1xf32> to vector<8x1xf32>
    %cst_6 = arith.constant 0.000000e+00 : f32
    %34 = vector.broadcast %cst_6 : f32 to vector<8x1xf32>
    %35 = arith.cmpf ogt, %33, %34 : vector<8x1xf32>
    %36 = vector.broadcast %35 : vector<8x1xi1> to vector<8x32xi1>
    %37 = arith.ori %3, %36 : vector<8x32xi1>
    %38 = vector.extract_strided_slice %0 {offsets = [32, 0], sizes = [8, 1], strides = [1, 1]} : vector<64x1xf32> to vector<8x1xf32>
    %cst_7 = arith.constant 0.000000e+00 : f32
    %39 = vector.broadcast %cst_7 : f32 to vector<8x1xf32>
    %40 = arith.cmpf ogt, %38, %39 : vector<8x1xf32>
    %41 = vector.broadcast %40 : vector<8x1xi1> to vector<8x32xi1>
    %42 = arith.ori %3, %41 : vector<8x32xi1>
    %43 = vector.extract_strided_slice %0 {offsets = [24, 0], sizes = [8, 1], strides = [1, 1]} : vector<64x1xf32> to vector<8x1xf32>
    %cst_8 = arith.constant 0.000000e+00 : f32
    %44 = vector.broadcast %cst_8 : f32 to vector<8x1xf32>
    %45 = arith.cmpf ogt, %43, %44 : vector<8x1xf32>
    %46 = vector.broadcast %45 : vector<8x1xi1> to vector<8x32xi1>
    %47 = arith.ori %3, %46 : vector<8x32xi1>
    %48 = vector.extract_strided_slice %0 {offsets = [16, 0], sizes = [8, 1], strides = [1, 1]} : vector<64x1xf32> to vector<8x1xf32>
    %cst_9 = arith.constant 0.000000e+00 : f32
    %49 = vector.broadcast %cst_9 : f32 to vector<8x1xf32>
    %50 = arith.cmpf ogt, %48, %49 : vector<8x1xf32>
    %51 = vector.broadcast %50 : vector<8x1xi1> to vector<8x32xi1>
    %52 = arith.ori %3, %51 : vector<8x32xi1>
    %53 = vector.extract_strided_slice %0 {offsets = [8, 0], sizes = [8, 1], strides = [1, 1]} : vector<64x1xf32> to vector<8x1xf32>
    %cst_10 = arith.constant 0.000000e+00 : f32
    %54 = vector.broadcast %cst_10 : f32 to vector<8x1xf32>
    %55 = arith.cmpf ogt, %53, %54 : vector<8x1xf32>
    %56 = vector.broadcast %55 : vector<8x1xi1> to vector<8x32xi1>
    %57 = arith.ori %3, %56 : vector<8x32xi1>
    %c0_11 = arith.constant 0 : index
    %c0_12 = arith.constant 0 : index
    %58 = vector.load %arg0[%c0_11, %c0_12] : memref<64x32xf32, #tpu.memory_space<vmem>>, vector<64x32xf32>
    %59 = arith.truncf %58 : vector<64x32xf32> to vector<64x32xbf16>
    %c0_13 = arith.constant 0 : index
    %c0_14 = arith.constant 0 : index
    %60 = vector.load %arg3[%c0_13, %c0_14] : memref<32x128xbf16, #tpu.memory_space<vmem>>, vector<32x128xbf16>
    %cst_15 = arith.constant dense<0.000000e+00> : vector<64x128xf32>
    %61 = tpu.matmul %59, %60, %cst_15 {dimension_numbers = #tpu.dot_dimension_numbers<[1], [0], [0], [1], [0, 0, 1, 1], [], []>} : vector<64x32xbf16>, vector<32x128xbf16>, vector<64x128xf32> -> vector<64x128xf32>
    %c0_16 = arith.constant 0 : index
    %c0_17 = arith.constant 0 : index
    %62 = vector.load %arg5[%c0_16, %c0_17] : memref<1x128xf32, #tpu.memory_space<vmem>>, vector<1x128xf32>
    %63 = vector.broadcast %62 : vector<1x128xf32> to vector<64x128xf32>
    %64 = arith.addf %61, %63 : vector<64x128xf32>
    %65 = vector.extract_strided_slice %64 {offsets = [0, 0], sizes = [8, 128], strides = [1, 1]} : vector<64x128xf32> to vector<8x128xf32>
    %66 = vector.extract_strided_slice %64 {offsets = [56, 0], sizes = [8, 128], strides = [1, 1]} : vector<64x128xf32> to vector<8x128xf32>
    %67 = arith.select %22, %65, %66 : vector<8x128xi1>, vector<8x128xf32>
    %68 = vector.extract_strided_slice %64 {offsets = [8, 0], sizes = [8, 128], strides = [1, 1]} : vector<64x128xf32> to vector<8x128xf32>
    %69 = vector.extract_strided_slice %64 {offsets = [48, 0], sizes = [8, 128], strides = [1, 1]} : vector<64x128xf32> to vector<8x128xf32>
    %70 = arith.select %22, %68, %69 : vector<8x128xi1>, vector<8x128xf32>
    %71 = vector.extract_strided_slice %64 {offsets = [16, 0], sizes = [8, 128], strides = [1, 1]} : vector<64x128xf32> to vector<8x128xf32>
    %72 = vector.extract_strided_slice %64 {offsets = [40, 0], sizes = [8, 128], strides = [1, 1]} : vector<64x128xf32> to vector<8x128xf32>
    %73 = arith.select %22, %71, %72 : vector<8x128xi1>, vector<8x128xf32>
    %74 = vector.extract_strided_slice %64 {offsets = [24, 0], sizes = [8, 128], strides = [1, 1]} : vector<64x128xf32> to vector<8x128xf32>
    %75 = vector.extract_strided_slice %64 {offsets = [32, 0], sizes = [8, 128], strides = [1, 1]} : vector<64x128xf32> to vector<8x128xf32>
    %76 = arith.select %22, %74, %75 : vector<8x128xi1>, vector<8x128xf32>
    %77 = vector.extract_strided_slice %64 {offsets = [32, 0], sizes = [8, 128], strides = [1, 1]} : vector<64x128xf32> to vector<8x128xf32>
    %78 = vector.extract_strided_slice %64 {offsets = [24, 0], sizes = [8, 128], strides = [1, 1]} : vector<64x128xf32> to vector<8x128xf32>
    %79 = arith.select %22, %77, %78 : vector<8x128xi1>, vector<8x128xf32>
    %80 = vector.extract_strided_slice %64 {offsets = [40, 0], sizes = [8, 128], strides = [1, 1]} : vector<64x128xf32> to vector<8x128xf32>
    %81 = vector.extract_strided_slice %64 {offsets = [16, 0], sizes = [8, 128], strides = [1, 1]} : vector<64x128xf32> to vector<8x128xf32>
    %82 = arith.select %22, %80, %81 : vector<8x128xi1>, vector<8x128xf32>
    %83 = vector.extract_strided_slice %64 {offsets = [48, 0], sizes = [8, 128], strides = [1, 1]} : vector<64x128xf32> to vector<8x128xf32>
    %84 = vector.extract_strided_slice %64 {offsets = [8, 0], sizes = [8, 128], strides = [1, 1]} : vector<64x128xf32> to vector<8x128xf32>
    %85 = arith.select %22, %83, %84 : vector<8x128xi1>, vector<8x128xf32>
    %86 = vector.extract_strided_slice %64 {offsets = [56, 0], sizes = [8, 128], strides = [1, 1]} : vector<64x128xf32> to vector<8x128xf32>
    %87 = vector.extract_strided_slice %64 {offsets = [0, 0], sizes = [8, 128], strides = [1, 1]} : vector<64x128xf32> to vector<8x128xf32>
    %88 = arith.select %22, %86, %87 : vector<8x128xi1>, vector<8x128xf32>
    %c0_18 = arith.constant 0 : index
    %c0_19 = arith.constant 0 : index
    %89 = vector.load %arg4[%c0_18, %c0_19] : memref<32x128xf32, #tpu.memory_space<vmem>>, vector<32x128xf32>
    %cst_20 = arith.constant 0.000000e+00 : f32
    %90 = vector.broadcast %cst_20 : f32 to vector<8x32xf32>
    %cst_21 = arith.constant 0.000000e+00 : f32
    %91 = vector.broadcast %cst_21 : f32 to vector<8x32xf32>
    %cst_22 = arith.constant dense<0.000000e+00> : vector<8x128xf32>
    %92 = tpu.matmul %90, %89, %cst_22 {dimension_numbers = #tpu.dot_dimension_numbers<[1], [0], [0], [1], [0, 0, 1, 1], [], []>} : vector<8x32xf32>, vector<32x128xf32>, vector<8x128xf32> -> vector<8x128xf32>
    %93 = arith.addf %67, %92 : vector<8x128xf32>
    %94 = arith.negf %93 : vector<8x128xf32>
    %95 = math.exp %94 : vector<8x128xf32>
    %cst_23 = arith.constant 1.000000e+00 : f32
    %96 = vector.broadcast %cst_23 : f32 to vector<8x128xf32>
    %97 = arith.addf %96, %95 : vector<8x128xf32>
    %98 = arith.divf %96, %97 : vector<8x128xf32>
    %99 = vector.extract_strided_slice %98 {offsets = [0, 0], sizes = [8, 32], strides = [1, 1]} : vector<8x128xf32> to vector<8x32xf32>
    %100 = vector.extract_strided_slice %98 {offsets = [0, 32], sizes = [8, 32], strides = [1, 1]} : vector<8x128xf32> to vector<8x32xf32>
    %101 = vector.extract_strided_slice %98 {offsets = [0, 64], sizes = [8, 32], strides = [1, 1]} : vector<8x128xf32> to vector<8x32xf32>
    %cst_24 = arith.constant 2.000000e+00 : f32
    %102 = vector.broadcast %cst_24 : f32 to vector<8x32xf32>
    %103 = arith.mulf %102, %101 : vector<8x32xf32>
    %cst_25 = arith.constant 1.000000e+00 : f32
    %104 = vector.broadcast %cst_25 : f32 to vector<8x32xf32>
    %105 = arith.subf %103, %104 : vector<8x32xf32>
    %106 = vector.extract_strided_slice %98 {offsets = [0, 96], sizes = [8, 32], strides = [1, 1]} : vector<8x128xf32> to vector<8x32xf32>
    %107 = arith.mulf %100, %91 : vector<8x32xf32>
    %108 = arith.mulf %99, %105 : vector<8x32xf32>
    %109 = arith.addf %107, %108 : vector<8x32xf32>
    %cst_26 = arith.constant 2.000000e+00 : f32
    %110 = vector.broadcast %cst_26 : f32 to vector<8x32xf32>
    %111 = arith.mulf %110, %109 : vector<8x32xf32>
    %112 = arith.negf %111 : vector<8x32xf32>
    %113 = math.exp %112 : vector<8x32xf32>
    %cst_27 = arith.constant 1.000000e+00 : f32
    %114 = vector.broadcast %cst_27 : f32 to vector<8x32xf32>
    %115 = arith.addf %114, %113 : vector<8x32xf32>
    %116 = arith.divf %114, %115 : vector<8x32xf32>
    %cst_28 = arith.constant 2.000000e+00 : f32
    %117 = vector.broadcast %cst_28 : f32 to vector<8x32xf32>
    %118 = arith.mulf %117, %116 : vector<8x32xf32>
    %cst_29 = arith.constant 1.000000e+00 : f32
    %119 = vector.broadcast %cst_29 : f32 to vector<8x32xf32>
    %120 = arith.subf %118, %119 : vector<8x32xf32>
    %121 = arith.mulf %106, %120 : vector<8x32xf32>
    %122 = arith.select %27, %121, %90 : vector<8x32xi1>, vector<8x32xf32>
    %123 = arith.select %27, %109, %91 : vector<8x32xi1>, vector<8x32xf32>
    %cst_30 = arith.constant dense<0.000000e+00> : vector<8x128xf32>
    %124 = tpu.matmul %122, %89, %cst_30 {dimension_numbers = #tpu.dot_dimension_numbers<[1], [0], [0], [1], [0, 0, 1, 1], [], []>} : vector<8x32xf32>, vector<32x128xf32>, vector<8x128xf32> -> vector<8x128xf32>
    %125 = arith.addf %70, %124 : vector<8x128xf32>
    %126 = arith.negf %125 : vector<8x128xf32>
    %127 = math.exp %126 : vector<8x128xf32>
    %cst_31 = arith.constant 1.000000e+00 : f32
    %128 = vector.broadcast %cst_31 : f32 to vector<8x128xf32>
    %129 = arith.addf %128, %127 : vector<8x128xf32>
    %130 = arith.divf %128, %129 : vector<8x128xf32>
    %131 = vector.extract_strided_slice %130 {offsets = [0, 0], sizes = [8, 32], strides = [1, 1]} : vector<8x128xf32> to vector<8x32xf32>
    %132 = vector.extract_strided_slice %130 {offsets = [0, 32], sizes = [8, 32], strides = [1, 1]} : vector<8x128xf32> to vector<8x32xf32>
    %133 = vector.extract_strided_slice %130 {offsets = [0, 64], sizes = [8, 32], strides = [1, 1]} : vector<8x128xf32> to vector<8x32xf32>
    %cst_32 = arith.constant 2.000000e+00 : f32
    %134 = vector.broadcast %cst_32 : f32 to vector<8x32xf32>
    %135 = arith.mulf %134, %133 : vector<8x32xf32>
    %cst_33 = arith.constant 1.000000e+00 : f32
    %136 = vector.broadcast %cst_33 : f32 to vector<8x32xf32>
    %137 = arith.subf %135, %136 : vector<8x32xf32>
    %138 = vector.extract_strided_slice %130 {offsets = [0, 96], sizes = [8, 32], strides = [1, 1]} : vector<8x128xf32> to vector<8x32xf32>
    %139 = arith.mulf %132, %123 : vector<8x32xf32>
    %140 = arith.mulf %131, %137 : vector<8x32xf32>
    %141 = arith.addf %139, %140 : vector<8x32xf32>
    %cst_34 = arith.constant 2.000000e+00 : f32
    %142 = vector.broadcast %cst_34 : f32 to vector<8x32xf32>
    %143 = arith.mulf %142, %141 : vector<8x32xf32>
    %144 = arith.negf %143 : vector<8x32xf32>
    %145 = math.exp %144 : vector<8x32xf32>
    %cst_35 = arith.constant 1.000000e+00 : f32
    %146 = vector.broadcast %cst_35 : f32 to vector<8x32xf32>
    %147 = arith.addf %146, %145 : vector<8x32xf32>
    %148 = arith.divf %146, %147 : vector<8x32xf32>
    %cst_36 = arith.constant 2.000000e+00 : f32
    %149 = vector.broadcast %cst_36 : f32 to vector<8x32xf32>
    %150 = arith.mulf %149, %148 : vector<8x32xf32>
    %cst_37 = arith.constant 1.000000e+00 : f32
    %151 = vector.broadcast %cst_37 : f32 to vector<8x32xf32>
    %152 = arith.subf %150, %151 : vector<8x32xf32>
    %153 = arith.mulf %138, %152 : vector<8x32xf32>
    %154 = arith.select %32, %153, %122 : vector<8x32xi1>, vector<8x32xf32>
    %155 = arith.select %32, %141, %123 : vector<8x32xi1>, vector<8x32xf32>
    %cst_38 = arith.constant dense<0.000000e+00> : vector<8x128xf32>
    %156 = tpu.matmul %154, %89, %cst_38 {dimension_numbers = #tpu.dot_dimension_numbers<[1], [0], [0], [1], [0, 0, 1, 1], [], []>} : vector<8x32xf32>, vector<32x128xf32>, vector<8x128xf32> -> vector<8x128xf32>
    %157 = arith.addf %73, %156 : vector<8x128xf32>
    %158 = arith.negf %157 : vector<8x128xf32>
    %159 = math.exp %158 : vector<8x128xf32>
    %cst_39 = arith.constant 1.000000e+00 : f32
    %160 = vector.broadcast %cst_39 : f32 to vector<8x128xf32>
    %161 = arith.addf %160, %159 : vector<8x128xf32>
    %162 = arith.divf %160, %161 : vector<8x128xf32>
    %163 = vector.extract_strided_slice %162 {offsets = [0, 0], sizes = [8, 32], strides = [1, 1]} : vector<8x128xf32> to vector<8x32xf32>
    %164 = vector.extract_strided_slice %162 {offsets = [0, 32], sizes = [8, 32], strides = [1, 1]} : vector<8x128xf32> to vector<8x32xf32>
    %165 = vector.extract_strided_slice %162 {offsets = [0, 64], sizes = [8, 32], strides = [1, 1]} : vector<8x128xf32> to vector<8x32xf32>
    %cst_40 = arith.constant 2.000000e+00 : f32
    %166 = vector.broadcast %cst_40 : f32 to vector<8x32xf32>
    %167 = arith.mulf %166, %165 : vector<8x32xf32>
    %cst_41 = arith.constant 1.000000e+00 : f32
    %168 = vector.broadcast %cst_41 : f32 to vector<8x32xf32>
    %169 = arith.subf %167, %168 : vector<8x32xf32>
    %170 = vector.extract_strided_slice %162 {offsets = [0, 96], sizes = [8, 32], strides = [1, 1]} : vector<8x128xf32> to vector<8x32xf32>
    %171 = arith.mulf %164, %155 : vector<8x32xf32>
    %172 = arith.mulf %163, %169 : vector<8x32xf32>
    %173 = arith.addf %171, %172 : vector<8x32xf32>
    %cst_42 = arith.constant 2.000000e+00 : f32
    %174 = vector.broadcast %cst_42 : f32 to vector<8x32xf32>
    %175 = arith.mulf %174, %173 : vector<8x32xf32>
    %176 = arith.negf %175 : vector<8x32xf32>
    %177 = math.exp %176 : vector<8x32xf32>
    %cst_43 = arith.constant 1.000000e+00 : f32
    %178 = vector.broadcast %cst_43 : f32 to vector<8x32xf32>
    %179 = arith.addf %178, %177 : vector<8x32xf32>
    %180 = arith.divf %178, %179 : vector<8x32xf32>
    %cst_44 = arith.constant 2.000000e+00 : f32
    %181 = vector.broadcast %cst_44 : f32 to vector<8x32xf32>
    %182 = arith.mulf %181, %180 : vector<8x32xf32>
    %cst_45 = arith.constant 1.000000e+00 : f32
    %183 = vector.broadcast %cst_45 : f32 to vector<8x32xf32>
    %184 = arith.subf %182, %183 : vector<8x32xf32>
    %185 = arith.mulf %170, %184 : vector<8x32xf32>
    %186 = arith.select %37, %185, %154 : vector<8x32xi1>, vector<8x32xf32>
    %187 = arith.select %37, %173, %155 : vector<8x32xi1>, vector<8x32xf32>
    %cst_46 = arith.constant dense<0.000000e+00> : vector<8x128xf32>
    %188 = tpu.matmul %186, %89, %cst_46 {dimension_numbers = #tpu.dot_dimension_numbers<[1], [0], [0], [1], [0, 0, 1, 1], [], []>} : vector<8x32xf32>, vector<32x128xf32>, vector<8x128xf32> -> vector<8x128xf32>
    %189 = arith.addf %76, %188 : vector<8x128xf32>
    %190 = arith.negf %189 : vector<8x128xf32>
    %191 = math.exp %190 : vector<8x128xf32>
    %cst_47 = arith.constant 1.000000e+00 : f32
    %192 = vector.broadcast %cst_47 : f32 to vector<8x128xf32>
    %193 = arith.addf %192, %191 : vector<8x128xf32>
    %194 = arith.divf %192, %193 : vector<8x128xf32>
    %195 = vector.extract_strided_slice %194 {offsets = [0, 0], sizes = [8, 32], strides = [1, 1]} : vector<8x128xf32> to vector<8x32xf32>
    %196 = vector.extract_strided_slice %194 {offsets = [0, 32], sizes = [8, 32], strides = [1, 1]} : vector<8x128xf32> to vector<8x32xf32>
    %197 = vector.extract_strided_slice %194 {offsets = [0, 64], sizes = [8, 32], strides = [1, 1]} : vector<8x128xf32> to vector<8x32xf32>
    %cst_48 = arith.constant 2.000000e+00 : f32
    %198 = vector.broadcast %cst_48 : f32 to vector<8x32xf32>
    %199 = arith.mulf %198, %197 : vector<8x32xf32>
    %cst_49 = arith.constant 1.000000e+00 : f32
    %200 = vector.broadcast %cst_49 : f32 to vector<8x32xf32>
    %201 = arith.subf %199, %200 : vector<8x32xf32>
    %202 = vector.extract_strided_slice %194 {offsets = [0, 96], sizes = [8, 32], strides = [1, 1]} : vector<8x128xf32> to vector<8x32xf32>
    %203 = arith.mulf %196, %187 : vector<8x32xf32>
    %204 = arith.mulf %195, %201 : vector<8x32xf32>
    %205 = arith.addf %203, %204 : vector<8x32xf32>
    %cst_50 = arith.constant 2.000000e+00 : f32
    %206 = vector.broadcast %cst_50 : f32 to vector<8x32xf32>
    %207 = arith.mulf %206, %205 : vector<8x32xf32>
    %208 = arith.negf %207 : vector<8x32xf32>
    %209 = math.exp %208 : vector<8x32xf32>
    %cst_51 = arith.constant 1.000000e+00 : f32
    %210 = vector.broadcast %cst_51 : f32 to vector<8x32xf32>
    %211 = arith.addf %210, %209 : vector<8x32xf32>
    %212 = arith.divf %210, %211 : vector<8x32xf32>
    %cst_52 = arith.constant 2.000000e+00 : f32
    %213 = vector.broadcast %cst_52 : f32 to vector<8x32xf32>
    %214 = arith.mulf %213, %212 : vector<8x32xf32>
    %cst_53 = arith.constant 1.000000e+00 : f32
    %215 = vector.broadcast %cst_53 : f32 to vector<8x32xf32>
    %216 = arith.subf %214, %215 : vector<8x32xf32>
    %217 = arith.mulf %202, %216 : vector<8x32xf32>
    %218 = arith.select %42, %217, %186 : vector<8x32xi1>, vector<8x32xf32>
    %219 = arith.select %42, %205, %187 : vector<8x32xi1>, vector<8x32xf32>
    %cst_54 = arith.constant dense<0.000000e+00> : vector<8x128xf32>
    %220 = tpu.matmul %218, %89, %cst_54 {dimension_numbers = #tpu.dot_dimension_numbers<[1], [0], [0], [1], [0, 0, 1, 1], [], []>} : vector<8x32xf32>, vector<32x128xf32>, vector<8x128xf32> -> vector<8x128xf32>
    %221 = arith.addf %79, %220 : vector<8x128xf32>
    %222 = arith.negf %221 : vector<8x128xf32>
    %223 = math.exp %222 : vector<8x128xf32>
    %cst_55 = arith.constant 1.000000e+00 : f32
    %224 = vector.broadcast %cst_55 : f32 to vector<8x128xf32>
    %225 = arith.addf %224, %223 : vector<8x128xf32>
    %226 = arith.divf %224, %225 : vector<8x128xf32>
    %227 = vector.extract_strided_slice %226 {offsets = [0, 0], sizes = [8, 32], strides = [1, 1]} : vector<8x128xf32> to vector<8x32xf32>
    %228 = vector.extract_strided_slice %226 {offsets = [0, 32], sizes = [8, 32], strides = [1, 1]} : vector<8x128xf32> to vector<8x32xf32>
    %229 = vector.extract_strided_slice %226 {offsets = [0, 64], sizes = [8, 32], strides = [1, 1]} : vector<8x128xf32> to vector<8x32xf32>
    %cst_56 = arith.constant 2.000000e+00 : f32
    %230 = vector.broadcast %cst_56 : f32 to vector<8x32xf32>
    %231 = arith.mulf %230, %229 : vector<8x32xf32>
    %cst_57 = arith.constant 1.000000e+00 : f32
    %232 = vector.broadcast %cst_57 : f32 to vector<8x32xf32>
    %233 = arith.subf %231, %232 : vector<8x32xf32>
    %234 = vector.extract_strided_slice %226 {offsets = [0, 96], sizes = [8, 32], strides = [1, 1]} : vector<8x128xf32> to vector<8x32xf32>
    %235 = arith.mulf %228, %219 : vector<8x32xf32>
    %236 = arith.mulf %227, %233 : vector<8x32xf32>
    %237 = arith.addf %235, %236 : vector<8x32xf32>
    %cst_58 = arith.constant 2.000000e+00 : f32
    %238 = vector.broadcast %cst_58 : f32 to vector<8x32xf32>
    %239 = arith.mulf %238, %237 : vector<8x32xf32>
    %240 = arith.negf %239 : vector<8x32xf32>
    %241 = math.exp %240 : vector<8x32xf32>
    %cst_59 = arith.constant 1.000000e+00 : f32
    %242 = vector.broadcast %cst_59 : f32 to vector<8x32xf32>
    %243 = arith.addf %242, %241 : vector<8x32xf32>
    %244 = arith.divf %242, %243 : vector<8x32xf32>
    %cst_60 = arith.constant 2.000000e+00 : f32
    %245 = vector.broadcast %cst_60 : f32 to vector<8x32xf32>
    %246 = arith.mulf %245, %244 : vector<8x32xf32>
    %cst_61 = arith.constant 1.000000e+00 : f32
    %247 = vector.broadcast %cst_61 : f32 to vector<8x32xf32>
    %248 = arith.subf %246, %247 : vector<8x32xf32>
    %249 = arith.mulf %234, %248 : vector<8x32xf32>
    %250 = arith.select %47, %249, %218 : vector<8x32xi1>, vector<8x32xf32>
    %251 = arith.select %47, %237, %219 : vector<8x32xi1>, vector<8x32xf32>
    %cst_62 = arith.constant dense<0.000000e+00> : vector<8x128xf32>
    %252 = tpu.matmul %250, %89, %cst_62 {dimension_numbers = #tpu.dot_dimension_numbers<[1], [0], [0], [1], [0, 0, 1, 1], [], []>} : vector<8x32xf32>, vector<32x128xf32>, vector<8x128xf32> -> vector<8x128xf32>
    %253 = arith.addf %82, %252 : vector<8x128xf32>
    %254 = arith.negf %253 : vector<8x128xf32>
    %255 = math.exp %254 : vector<8x128xf32>
    %cst_63 = arith.constant 1.000000e+00 : f32
    %256 = vector.broadcast %cst_63 : f32 to vector<8x128xf32>
    %257 = arith.addf %256, %255 : vector<8x128xf32>
    %258 = arith.divf %256, %257 : vector<8x128xf32>
    %259 = vector.extract_strided_slice %258 {offsets = [0, 0], sizes = [8, 32], strides = [1, 1]} : vector<8x128xf32> to vector<8x32xf32>
    %260 = vector.extract_strided_slice %258 {offsets = [0, 32], sizes = [8, 32], strides = [1, 1]} : vector<8x128xf32> to vector<8x32xf32>
    %261 = vector.extract_strided_slice %258 {offsets = [0, 64], sizes = [8, 32], strides = [1, 1]} : vector<8x128xf32> to vector<8x32xf32>
    %cst_64 = arith.constant 2.000000e+00 : f32
    %262 = vector.broadcast %cst_64 : f32 to vector<8x32xf32>
    %263 = arith.mulf %262, %261 : vector<8x32xf32>
    %cst_65 = arith.constant 1.000000e+00 : f32
    %264 = vector.broadcast %cst_65 : f32 to vector<8x32xf32>
    %265 = arith.subf %263, %264 : vector<8x32xf32>
    %266 = vector.extract_strided_slice %258 {offsets = [0, 96], sizes = [8, 32], strides = [1, 1]} : vector<8x128xf32> to vector<8x32xf32>
    %267 = arith.mulf %260, %251 : vector<8x32xf32>
    %268 = arith.mulf %259, %265 : vector<8x32xf32>
    %269 = arith.addf %267, %268 : vector<8x32xf32>
    %cst_66 = arith.constant 2.000000e+00 : f32
    %270 = vector.broadcast %cst_66 : f32 to vector<8x32xf32>
    %271 = arith.mulf %270, %269 : vector<8x32xf32>
    %272 = arith.negf %271 : vector<8x32xf32>
    %273 = math.exp %272 : vector<8x32xf32>
    %cst_67 = arith.constant 1.000000e+00 : f32
    %274 = vector.broadcast %cst_67 : f32 to vector<8x32xf32>
    %275 = arith.addf %274, %273 : vector<8x32xf32>
    %276 = arith.divf %274, %275 : vector<8x32xf32>
    %cst_68 = arith.constant 2.000000e+00 : f32
    %277 = vector.broadcast %cst_68 : f32 to vector<8x32xf32>
    %278 = arith.mulf %277, %276 : vector<8x32xf32>
    %cst_69 = arith.constant 1.000000e+00 : f32
    %279 = vector.broadcast %cst_69 : f32 to vector<8x32xf32>
    %280 = arith.subf %278, %279 : vector<8x32xf32>
    %281 = arith.mulf %266, %280 : vector<8x32xf32>
    %282 = arith.select %52, %281, %250 : vector<8x32xi1>, vector<8x32xf32>
    %283 = arith.select %52, %269, %251 : vector<8x32xi1>, vector<8x32xf32>
    %cst_70 = arith.constant dense<0.000000e+00> : vector<8x128xf32>
    %284 = tpu.matmul %282, %89, %cst_70 {dimension_numbers = #tpu.dot_dimension_numbers<[1], [0], [0], [1], [0, 0, 1, 1], [], []>} : vector<8x32xf32>, vector<32x128xf32>, vector<8x128xf32> -> vector<8x128xf32>
    %285 = arith.addf %85, %284 : vector<8x128xf32>
    %286 = arith.negf %285 : vector<8x128xf32>
    %287 = math.exp %286 : vector<8x128xf32>
    %cst_71 = arith.constant 1.000000e+00 : f32
    %288 = vector.broadcast %cst_71 : f32 to vector<8x128xf32>
    %289 = arith.addf %288, %287 : vector<8x128xf32>
    %290 = arith.divf %288, %289 : vector<8x128xf32>
    %291 = vector.extract_strided_slice %290 {offsets = [0, 0], sizes = [8, 32], strides = [1, 1]} : vector<8x128xf32> to vector<8x32xf32>
    %292 = vector.extract_strided_slice %290 {offsets = [0, 32], sizes = [8, 32], strides = [1, 1]} : vector<8x128xf32> to vector<8x32xf32>
    %293 = vector.extract_strided_slice %290 {offsets = [0, 64], sizes = [8, 32], strides = [1, 1]} : vector<8x128xf32> to vector<8x32xf32>
    %cst_72 = arith.constant 2.000000e+00 : f32
    %294 = vector.broadcast %cst_72 : f32 to vector<8x32xf32>
    %295 = arith.mulf %294, %293 : vector<8x32xf32>
    %cst_73 = arith.constant 1.000000e+00 : f32
    %296 = vector.broadcast %cst_73 : f32 to vector<8x32xf32>
    %297 = arith.subf %295, %296 : vector<8x32xf32>
    %298 = vector.extract_strided_slice %290 {offsets = [0, 96], sizes = [8, 32], strides = [1, 1]} : vector<8x128xf32> to vector<8x32xf32>
    %299 = arith.mulf %292, %283 : vector<8x32xf32>
    %300 = arith.mulf %291, %297 : vector<8x32xf32>
    %301 = arith.addf %299, %300 : vector<8x32xf32>
    %cst_74 = arith.constant 2.000000e+00 : f32
    %302 = vector.broadcast %cst_74 : f32 to vector<8x32xf32>
    %303 = arith.mulf %302, %301 : vector<8x32xf32>
    %304 = arith.negf %303 : vector<8x32xf32>
    %305 = math.exp %304 : vector<8x32xf32>
    %cst_75 = arith.constant 1.000000e+00 : f32
    %306 = vector.broadcast %cst_75 : f32 to vector<8x32xf32>
    %307 = arith.addf %306, %305 : vector<8x32xf32>
    %308 = arith.divf %306, %307 : vector<8x32xf32>
    %cst_76 = arith.constant 2.000000e+00 : f32
    %309 = vector.broadcast %cst_76 : f32 to vector<8x32xf32>
    %310 = arith.mulf %309, %308 : vector<8x32xf32>
    %cst_77 = arith.constant 1.000000e+00 : f32
    %311 = vector.broadcast %cst_77 : f32 to vector<8x32xf32>
    %312 = arith.subf %310, %311 : vector<8x32xf32>
    %313 = arith.mulf %298, %312 : vector<8x32xf32>
    %314 = arith.select %57, %313, %282 : vector<8x32xi1>, vector<8x32xf32>
    %315 = arith.select %57, %301, %283 : vector<8x32xi1>, vector<8x32xf32>
    %cst_78 = arith.constant dense<0.000000e+00> : vector<8x128xf32>
    %316 = tpu.matmul %314, %89, %cst_78 {dimension_numbers = #tpu.dot_dimension_numbers<[1], [0], [0], [1], [0, 0, 1, 1], [], []>} : vector<8x32xf32>, vector<32x128xf32>, vector<8x128xf32> -> vector<8x128xf32>
    %317 = arith.addf %88, %316 : vector<8x128xf32>
    %318 = arith.negf %317 : vector<8x128xf32>
    %319 = math.exp %318 : vector<8x128xf32>
    %cst_79 = arith.constant 1.000000e+00 : f32
    %320 = vector.broadcast %cst_79 : f32 to vector<8x128xf32>
    %321 = arith.addf %320, %319 : vector<8x128xf32>
    %322 = arith.divf %320, %321 : vector<8x128xf32>
    %323 = vector.extract_strided_slice %322 {offsets = [0, 0], sizes = [8, 32], strides = [1, 1]} : vector<8x128xf32> to vector<8x32xf32>
    %324 = vector.extract_strided_slice %322 {offsets = [0, 32], sizes = [8, 32], strides = [1, 1]} : vector<8x128xf32> to vector<8x32xf32>
    %325 = vector.extract_strided_slice %322 {offsets = [0, 64], sizes = [8, 32], strides = [1, 1]} : vector<8x128xf32> to vector<8x32xf32>
    %cst_80 = arith.constant 2.000000e+00 : f32
    %326 = vector.broadcast %cst_80 : f32 to vector<8x32xf32>
    %327 = arith.mulf %326, %325 : vector<8x32xf32>
    %cst_81 = arith.constant 1.000000e+00 : f32
    %328 = vector.broadcast %cst_81 : f32 to vector<8x32xf32>
    %329 = arith.subf %327, %328 : vector<8x32xf32>
    %330 = vector.extract_strided_slice %322 {offsets = [0, 96], sizes = [8, 32], strides = [1, 1]} : vector<8x128xf32> to vector<8x32xf32>
    %331 = arith.mulf %324, %315 : vector<8x32xf32>
    %332 = arith.mulf %323, %329 : vector<8x32xf32>
    %333 = arith.addf %331, %332 : vector<8x32xf32>
    %cst_82 = arith.constant 2.000000e+00 : f32
    %334 = vector.broadcast %cst_82 : f32 to vector<8x32xf32>
    %335 = arith.mulf %334, %333 : vector<8x32xf32>
    %336 = arith.negf %335 : vector<8x32xf32>
    %337 = math.exp %336 : vector<8x32xf32>
    %cst_83 = arith.constant 1.000000e+00 : f32
    %338 = vector.broadcast %cst_83 : f32 to vector<8x32xf32>
    %339 = arith.addf %338, %337 : vector<8x32xf32>
    %340 = arith.divf %338, %339 : vector<8x32xf32>
    %cst_84 = arith.constant 2.000000e+00 : f32
    %341 = vector.broadcast %cst_84 : f32 to vector<8x32xf32>
    %342 = arith.mulf %341, %340 : vector<8x32xf32>
    %cst_85 = arith.constant 1.000000e+00 : f32
    %343 = vector.broadcast %cst_85 : f32 to vector<8x32xf32>
    %344 = arith.subf %342, %343 : vector<8x32xf32>
    %345 = arith.mulf %330, %344 : vector<8x32xf32>
    %346 = arith.select %3, %121, %345 : vector<8x32xi1>, vector<8x32xf32>
    %347 = arith.select %3, %153, %313 : vector<8x32xi1>, vector<8x32xf32>
    %348 = arith.select %3, %185, %281 : vector<8x32xi1>, vector<8x32xf32>
    %349 = arith.select %3, %217, %249 : vector<8x32xi1>, vector<8x32xf32>
    %350 = arith.select %3, %249, %217 : vector<8x32xi1>, vector<8x32xf32>
    %351 = arith.select %3, %281, %185 : vector<8x32xi1>, vector<8x32xf32>
    %352 = arith.select %3, %313, %153 : vector<8x32xi1>, vector<8x32xf32>
    %353 = arith.select %3, %345, %121 : vector<8x32xi1>, vector<8x32xf32>
    %354 = tpu.concatenate %346, %347, %348, %349, %350, %351, %352, %353 in 0 : vector<8x32xf32>, vector<8x32xf32>, vector<8x32xf32>, vector<8x32xf32>, vector<8x32xf32>, vector<8x32xf32>, vector<8x32xf32>, vector<8x32xf32> -> vector<64x32xf32>
    %355 = vector.broadcast %0 : vector<64x1xf32> to vector<64x32xf32>
    %356 = arith.mulf %354, %355 : vector<64x32xf32>
    %357 = arith.truncf %356 : vector<64x32xf32> to vector<64x32xbf16>
    %c0_86 = arith.constant 0 : index
    %c0_87 = arith.constant 0 : index
    %358 = vector.load %arg6[%c0_86, %c0_87] : memref<32x128xbf16, #tpu.memory_space<vmem>>, vector<32x128xbf16>
    %cst_88 = arith.constant dense<0.000000e+00> : vector<64x128xf32>
    %359 = tpu.matmul %357, %358, %cst_88 {dimension_numbers = #tpu.dot_dimension_numbers<[1], [0], [0], [1], [0, 0, 1, 1], [], []>} : vector<64x32xbf16>, vector<32x128xbf16>, vector<64x128xf32> -> vector<64x128xf32>
    %c0_89 = arith.constant 0 : index
    %c0_90 = arith.constant 0 : index
    %360 = vector.load %arg8[%c0_89, %c0_90] : memref<1x128xf32, #tpu.memory_space<vmem>>, vector<1x128xf32>
    %361 = vector.broadcast %360 : vector<1x128xf32> to vector<64x128xf32>
    %362 = arith.addf %359, %361 : vector<64x128xf32>
    %363 = vector.extract_strided_slice %362 {offsets = [0, 0], sizes = [8, 128], strides = [1, 1]} : vector<64x128xf32> to vector<8x128xf32>
    %364 = vector.extract_strided_slice %362 {offsets = [56, 0], sizes = [8, 128], strides = [1, 1]} : vector<64x128xf32> to vector<8x128xf32>
    %365 = arith.select %22, %363, %364 : vector<8x128xi1>, vector<8x128xf32>
    %366 = vector.extract_strided_slice %362 {offsets = [8, 0], sizes = [8, 128], strides = [1, 1]} : vector<64x128xf32> to vector<8x128xf32>
    %367 = vector.extract_strided_slice %362 {offsets = [48, 0], sizes = [8, 128], strides = [1, 1]} : vector<64x128xf32> to vector<8x128xf32>
    %368 = arith.select %22, %366, %367 : vector<8x128xi1>, vector<8x128xf32>
    %369 = vector.extract_strided_slice %362 {offsets = [16, 0], sizes = [8, 128], strides = [1, 1]} : vector<64x128xf32> to vector<8x128xf32>
    %370 = vector.extract_strided_slice %362 {offsets = [40, 0], sizes = [8, 128], strides = [1, 1]} : vector<64x128xf32> to vector<8x128xf32>
    %371 = arith.select %22, %369, %370 : vector<8x128xi1>, vector<8x128xf32>
    %372 = vector.extract_strided_slice %362 {offsets = [24, 0], sizes = [8, 128], strides = [1, 1]} : vector<64x128xf32> to vector<8x128xf32>
    %373 = vector.extract_strided_slice %362 {offsets = [32, 0], sizes = [8, 128], strides = [1, 1]} : vector<64x128xf32> to vector<8x128xf32>
    %374 = arith.select %22, %372, %373 : vector<8x128xi1>, vector<8x128xf32>
    %375 = vector.extract_strided_slice %362 {offsets = [32, 0], sizes = [8, 128], strides = [1, 1]} : vector<64x128xf32> to vector<8x128xf32>
    %376 = vector.extract_strided_slice %362 {offsets = [24, 0], sizes = [8, 128], strides = [1, 1]} : vector<64x128xf32> to vector<8x128xf32>
    %377 = arith.select %22, %375, %376 : vector<8x128xi1>, vector<8x128xf32>
    %378 = vector.extract_strided_slice %362 {offsets = [40, 0], sizes = [8, 128], strides = [1, 1]} : vector<64x128xf32> to vector<8x128xf32>
    %379 = vector.extract_strided_slice %362 {offsets = [16, 0], sizes = [8, 128], strides = [1, 1]} : vector<64x128xf32> to vector<8x128xf32>
    %380 = arith.select %22, %378, %379 : vector<8x128xi1>, vector<8x128xf32>
    %381 = vector.extract_strided_slice %362 {offsets = [48, 0], sizes = [8, 128], strides = [1, 1]} : vector<64x128xf32> to vector<8x128xf32>
    %382 = vector.extract_strided_slice %362 {offsets = [8, 0], sizes = [8, 128], strides = [1, 1]} : vector<64x128xf32> to vector<8x128xf32>
    %383 = arith.select %22, %381, %382 : vector<8x128xi1>, vector<8x128xf32>
    %384 = vector.extract_strided_slice %362 {offsets = [56, 0], sizes = [8, 128], strides = [1, 1]} : vector<64x128xf32> to vector<8x128xf32>
    %385 = vector.extract_strided_slice %362 {offsets = [0, 0], sizes = [8, 128], strides = [1, 1]} : vector<64x128xf32> to vector<8x128xf32>
    %386 = arith.select %22, %384, %385 : vector<8x128xi1>, vector<8x128xf32>
    %c0_91 = arith.constant 0 : index
    %c0_92 = arith.constant 0 : index
    %387 = vector.load %arg7[%c0_91, %c0_92] : memref<32x128xf32, #tpu.memory_space<vmem>>, vector<32x128xf32>
    %cst_93 = arith.constant 0.000000e+00 : f32
    %388 = vector.broadcast %cst_93 : f32 to vector<8x32xf32>
    %cst_94 = arith.constant 0.000000e+00 : f32
    %389 = vector.broadcast %cst_94 : f32 to vector<8x32xf32>
    %cst_95 = arith.constant dense<0.000000e+00> : vector<8x128xf32>
    %390 = tpu.matmul %388, %387, %cst_95 {dimension_numbers = #tpu.dot_dimension_numbers<[1], [0], [0], [1], [0, 0, 1, 1], [], []>} : vector<8x32xf32>, vector<32x128xf32>, vector<8x128xf32> -> vector<8x128xf32>
    %391 = arith.addf %365, %390 : vector<8x128xf32>
    %392 = arith.negf %391 : vector<8x128xf32>
    %393 = math.exp %392 : vector<8x128xf32>
    %cst_96 = arith.constant 1.000000e+00 : f32
    %394 = vector.broadcast %cst_96 : f32 to vector<8x128xf32>
    %395 = arith.addf %394, %393 : vector<8x128xf32>
    %396 = arith.divf %394, %395 : vector<8x128xf32>
    %397 = vector.extract_strided_slice %396 {offsets = [0, 0], sizes = [8, 32], strides = [1, 1]} : vector<8x128xf32> to vector<8x32xf32>
    %398 = vector.extract_strided_slice %396 {offsets = [0, 32], sizes = [8, 32], strides = [1, 1]} : vector<8x128xf32> to vector<8x32xf32>
    %399 = vector.extract_strided_slice %396 {offsets = [0, 64], sizes = [8, 32], strides = [1, 1]} : vector<8x128xf32> to vector<8x32xf32>
    %cst_97 = arith.constant 2.000000e+00 : f32
    %400 = vector.broadcast %cst_97 : f32 to vector<8x32xf32>
    %401 = arith.mulf %400, %399 : vector<8x32xf32>
    %cst_98 = arith.constant 1.000000e+00 : f32
    %402 = vector.broadcast %cst_98 : f32 to vector<8x32xf32>
    %403 = arith.subf %401, %402 : vector<8x32xf32>
    %404 = vector.extract_strided_slice %396 {offsets = [0, 96], sizes = [8, 32], strides = [1, 1]} : vector<8x128xf32> to vector<8x32xf32>
    %405 = arith.mulf %398, %389 : vector<8x32xf32>
    %406 = arith.mulf %397, %403 : vector<8x32xf32>
    %407 = arith.addf %405, %406 : vector<8x32xf32>
    %cst_99 = arith.constant 2.000000e+00 : f32
    %408 = vector.broadcast %cst_99 : f32 to vector<8x32xf32>
    %409 = arith.mulf %408, %407 : vector<8x32xf32>
    %410 = arith.negf %409 : vector<8x32xf32>
    %411 = math.exp %410 : vector<8x32xf32>
    %cst_100 = arith.constant 1.000000e+00 : f32
    %412 = vector.broadcast %cst_100 : f32 to vector<8x32xf32>
    %413 = arith.addf %412, %411 : vector<8x32xf32>
    %414 = arith.divf %412, %413 : vector<8x32xf32>
    %cst_101 = arith.constant 2.000000e+00 : f32
    %415 = vector.broadcast %cst_101 : f32 to vector<8x32xf32>
    %416 = arith.mulf %415, %414 : vector<8x32xf32>
    %cst_102 = arith.constant 1.000000e+00 : f32
    %417 = vector.broadcast %cst_102 : f32 to vector<8x32xf32>
    %418 = arith.subf %416, %417 : vector<8x32xf32>
    %419 = arith.mulf %404, %418 : vector<8x32xf32>
    %420 = arith.select %27, %419, %388 : vector<8x32xi1>, vector<8x32xf32>
    %421 = arith.select %27, %407, %389 : vector<8x32xi1>, vector<8x32xf32>
    %cst_103 = arith.constant dense<0.000000e+00> : vector<8x128xf32>
    %422 = tpu.matmul %420, %387, %cst_103 {dimension_numbers = #tpu.dot_dimension_numbers<[1], [0], [0], [1], [0, 0, 1, 1], [], []>} : vector<8x32xf32>, vector<32x128xf32>, vector<8x128xf32> -> vector<8x128xf32>
    %423 = arith.addf %368, %422 : vector<8x128xf32>
    %424 = arith.negf %423 : vector<8x128xf32>
    %425 = math.exp %424 : vector<8x128xf32>
    %cst_104 = arith.constant 1.000000e+00 : f32
    %426 = vector.broadcast %cst_104 : f32 to vector<8x128xf32>
    %427 = arith.addf %426, %425 : vector<8x128xf32>
    %428 = arith.divf %426, %427 : vector<8x128xf32>
    %429 = vector.extract_strided_slice %428 {offsets = [0, 0], sizes = [8, 32], strides = [1, 1]} : vector<8x128xf32> to vector<8x32xf32>
    %430 = vector.extract_strided_slice %428 {offsets = [0, 32], sizes = [8, 32], strides = [1, 1]} : vector<8x128xf32> to vector<8x32xf32>
    %431 = vector.extract_strided_slice %428 {offsets = [0, 64], sizes = [8, 32], strides = [1, 1]} : vector<8x128xf32> to vector<8x32xf32>
    %cst_105 = arith.constant 2.000000e+00 : f32
    %432 = vector.broadcast %cst_105 : f32 to vector<8x32xf32>
    %433 = arith.mulf %432, %431 : vector<8x32xf32>
    %cst_106 = arith.constant 1.000000e+00 : f32
    %434 = vector.broadcast %cst_106 : f32 to vector<8x32xf32>
    %435 = arith.subf %433, %434 : vector<8x32xf32>
    %436 = vector.extract_strided_slice %428 {offsets = [0, 96], sizes = [8, 32], strides = [1, 1]} : vector<8x128xf32> to vector<8x32xf32>
    %437 = arith.mulf %430, %421 : vector<8x32xf32>
    %438 = arith.mulf %429, %435 : vector<8x32xf32>
    %439 = arith.addf %437, %438 : vector<8x32xf32>
    %cst_107 = arith.constant 2.000000e+00 : f32
    %440 = vector.broadcast %cst_107 : f32 to vector<8x32xf32>
    %441 = arith.mulf %440, %439 : vector<8x32xf32>
    %442 = arith.negf %441 : vector<8x32xf32>
    %443 = math.exp %442 : vector<8x32xf32>
    %cst_108 = arith.constant 1.000000e+00 : f32
    %444 = vector.broadcast %cst_108 : f32 to vector<8x32xf32>
    %445 = arith.addf %444, %443 : vector<8x32xf32>
    %446 = arith.divf %444, %445 : vector<8x32xf32>
    %cst_109 = arith.constant 2.000000e+00 : f32
    %447 = vector.broadcast %cst_109 : f32 to vector<8x32xf32>
    %448 = arith.mulf %447, %446 : vector<8x32xf32>
    %cst_110 = arith.constant 1.000000e+00 : f32
    %449 = vector.broadcast %cst_110 : f32 to vector<8x32xf32>
    %450 = arith.subf %448, %449 : vector<8x32xf32>
    %451 = arith.mulf %436, %450 : vector<8x32xf32>
    %452 = arith.select %32, %451, %420 : vector<8x32xi1>, vector<8x32xf32>
    %453 = arith.select %32, %439, %421 : vector<8x32xi1>, vector<8x32xf32>
    %cst_111 = arith.constant dense<0.000000e+00> : vector<8x128xf32>
    %454 = tpu.matmul %452, %387, %cst_111 {dimension_numbers = #tpu.dot_dimension_numbers<[1], [0], [0], [1], [0, 0, 1, 1], [], []>} : vector<8x32xf32>, vector<32x128xf32>, vector<8x128xf32> -> vector<8x128xf32>
    %455 = arith.addf %371, %454 : vector<8x128xf32>
    %456 = arith.negf %455 : vector<8x128xf32>
    %457 = math.exp %456 : vector<8x128xf32>
    %cst_112 = arith.constant 1.000000e+00 : f32
    %458 = vector.broadcast %cst_112 : f32 to vector<8x128xf32>
    %459 = arith.addf %458, %457 : vector<8x128xf32>
    %460 = arith.divf %458, %459 : vector<8x128xf32>
    %461 = vector.extract_strided_slice %460 {offsets = [0, 0], sizes = [8, 32], strides = [1, 1]} : vector<8x128xf32> to vector<8x32xf32>
    %462 = vector.extract_strided_slice %460 {offsets = [0, 32], sizes = [8, 32], strides = [1, 1]} : vector<8x128xf32> to vector<8x32xf32>
    %463 = vector.extract_strided_slice %460 {offsets = [0, 64], sizes = [8, 32], strides = [1, 1]} : vector<8x128xf32> to vector<8x32xf32>
    %cst_113 = arith.constant 2.000000e+00 : f32
    %464 = vector.broadcast %cst_113 : f32 to vector<8x32xf32>
    %465 = arith.mulf %464, %463 : vector<8x32xf32>
    %cst_114 = arith.constant 1.000000e+00 : f32
    %466 = vector.broadcast %cst_114 : f32 to vector<8x32xf32>
    %467 = arith.subf %465, %466 : vector<8x32xf32>
    %468 = vector.extract_strided_slice %460 {offsets = [0, 96], sizes = [8, 32], strides = [1, 1]} : vector<8x128xf32> to vector<8x32xf32>
    %469 = arith.mulf %462, %453 : vector<8x32xf32>
    %470 = arith.mulf %461, %467 : vector<8x32xf32>
    %471 = arith.addf %469, %470 : vector<8x32xf32>
    %cst_115 = arith.constant 2.000000e+00 : f32
    %472 = vector.broadcast %cst_115 : f32 to vector<8x32xf32>
    %473 = arith.mulf %472, %471 : vector<8x32xf32>
    %474 = arith.negf %473 : vector<8x32xf32>
    %475 = math.exp %474 : vector<8x32xf32>
    %cst_116 = arith.constant 1.000000e+00 : f32
    %476 = vector.broadcast %cst_116 : f32 to vector<8x32xf32>
    %477 = arith.addf %476, %475 : vector<8x32xf32>
    %478 = arith.divf %476, %477 : vector<8x32xf32>
    %cst_117 = arith.constant 2.000000e+00 : f32
    %479 = vector.broadcast %cst_117 : f32 to vector<8x32xf32>
    %480 = arith.mulf %479, %478 : vector<8x32xf32>
    %cst_118 = arith.constant 1.000000e+00 : f32
    %481 = vector.broadcast %cst_118 : f32 to vector<8x32xf32>
    %482 = arith.subf %480, %481 : vector<8x32xf32>
    %483 = arith.mulf %468, %482 : vector<8x32xf32>
    %484 = arith.select %37, %483, %452 : vector<8x32xi1>, vector<8x32xf32>
    %485 = arith.select %37, %471, %453 : vector<8x32xi1>, vector<8x32xf32>
    %cst_119 = arith.constant dense<0.000000e+00> : vector<8x128xf32>
    %486 = tpu.matmul %484, %387, %cst_119 {dimension_numbers = #tpu.dot_dimension_numbers<[1], [0], [0], [1], [0, 0, 1, 1], [], []>} : vector<8x32xf32>, vector<32x128xf32>, vector<8x128xf32> -> vector<8x128xf32>
    %487 = arith.addf %374, %486 : vector<8x128xf32>
    %488 = arith.negf %487 : vector<8x128xf32>
    %489 = math.exp %488 : vector<8x128xf32>
    %cst_120 = arith.constant 1.000000e+00 : f32
    %490 = vector.broadcast %cst_120 : f32 to vector<8x128xf32>
    %491 = arith.addf %490, %489 : vector<8x128xf32>
    %492 = arith.divf %490, %491 : vector<8x128xf32>
    %493 = vector.extract_strided_slice %492 {offsets = [0, 0], sizes = [8, 32], strides = [1, 1]} : vector<8x128xf32> to vector<8x32xf32>
    %494 = vector.extract_strided_slice %492 {offsets = [0, 32], sizes = [8, 32], strides = [1, 1]} : vector<8x128xf32> to vector<8x32xf32>
    %495 = vector.extract_strided_slice %492 {offsets = [0, 64], sizes = [8, 32], strides = [1, 1]} : vector<8x128xf32> to vector<8x32xf32>
    %cst_121 = arith.constant 2.000000e+00 : f32
    %496 = vector.broadcast %cst_121 : f32 to vector<8x32xf32>
    %497 = arith.mulf %496, %495 : vector<8x32xf32>
    %cst_122 = arith.constant 1.000000e+00 : f32
    %498 = vector.broadcast %cst_122 : f32 to vector<8x32xf32>
    %499 = arith.subf %497, %498 : vector<8x32xf32>
    %500 = vector.extract_strided_slice %492 {offsets = [0, 96], sizes = [8, 32], strides = [1, 1]} : vector<8x128xf32> to vector<8x32xf32>
    %501 = arith.mulf %494, %485 : vector<8x32xf32>
    %502 = arith.mulf %493, %499 : vector<8x32xf32>
    %503 = arith.addf %501, %502 : vector<8x32xf32>
    %cst_123 = arith.constant 2.000000e+00 : f32
    %504 = vector.broadcast %cst_123 : f32 to vector<8x32xf32>
    %505 = arith.mulf %504, %503 : vector<8x32xf32>
    %506 = arith.negf %505 : vector<8x32xf32>
    %507 = math.exp %506 : vector<8x32xf32>
    %cst_124 = arith.constant 1.000000e+00 : f32
    %508 = vector.broadcast %cst_124 : f32 to vector<8x32xf32>
    %509 = arith.addf %508, %507 : vector<8x32xf32>
    %510 = arith.divf %508, %509 : vector<8x32xf32>
    %cst_125 = arith.constant 2.000000e+00 : f32
    %511 = vector.broadcast %cst_125 : f32 to vector<8x32xf32>
    %512 = arith.mulf %511, %510 : vector<8x32xf32>
    %cst_126 = arith.constant 1.000000e+00 : f32
    %513 = vector.broadcast %cst_126 : f32 to vector<8x32xf32>
    %514 = arith.subf %512, %513 : vector<8x32xf32>
    %515 = arith.mulf %500, %514 : vector<8x32xf32>
    %516 = arith.select %42, %515, %484 : vector<8x32xi1>, vector<8x32xf32>
    %517 = arith.select %42, %503, %485 : vector<8x32xi1>, vector<8x32xf32>
    %cst_127 = arith.constant dense<0.000000e+00> : vector<8x128xf32>
    %518 = tpu.matmul %516, %387, %cst_127 {dimension_numbers = #tpu.dot_dimension_numbers<[1], [0], [0], [1], [0, 0, 1, 1], [], []>} : vector<8x32xf32>, vector<32x128xf32>, vector<8x128xf32> -> vector<8x128xf32>
    %519 = arith.addf %377, %518 : vector<8x128xf32>
    %520 = arith.negf %519 : vector<8x128xf32>
    %521 = math.exp %520 : vector<8x128xf32>
    %cst_128 = arith.constant 1.000000e+00 : f32
    %522 = vector.broadcast %cst_128 : f32 to vector<8x128xf32>
    %523 = arith.addf %522, %521 : vector<8x128xf32>
    %524 = arith.divf %522, %523 : vector<8x128xf32>
    %525 = vector.extract_strided_slice %524 {offsets = [0, 0], sizes = [8, 32], strides = [1, 1]} : vector<8x128xf32> to vector<8x32xf32>
    %526 = vector.extract_strided_slice %524 {offsets = [0, 32], sizes = [8, 32], strides = [1, 1]} : vector<8x128xf32> to vector<8x32xf32>
    %527 = vector.extract_strided_slice %524 {offsets = [0, 64], sizes = [8, 32], strides = [1, 1]} : vector<8x128xf32> to vector<8x32xf32>
    %cst_129 = arith.constant 2.000000e+00 : f32
    %528 = vector.broadcast %cst_129 : f32 to vector<8x32xf32>
    %529 = arith.mulf %528, %527 : vector<8x32xf32>
    %cst_130 = arith.constant 1.000000e+00 : f32
    %530 = vector.broadcast %cst_130 : f32 to vector<8x32xf32>
    %531 = arith.subf %529, %530 : vector<8x32xf32>
    %532 = vector.extract_strided_slice %524 {offsets = [0, 96], sizes = [8, 32], strides = [1, 1]} : vector<8x128xf32> to vector<8x32xf32>
    %533 = arith.mulf %526, %517 : vector<8x32xf32>
    %534 = arith.mulf %525, %531 : vector<8x32xf32>
    %535 = arith.addf %533, %534 : vector<8x32xf32>
    %cst_131 = arith.constant 2.000000e+00 : f32
    %536 = vector.broadcast %cst_131 : f32 to vector<8x32xf32>
    %537 = arith.mulf %536, %535 : vector<8x32xf32>
    %538 = arith.negf %537 : vector<8x32xf32>
    %539 = math.exp %538 : vector<8x32xf32>
    %cst_132 = arith.constant 1.000000e+00 : f32
    %540 = vector.broadcast %cst_132 : f32 to vector<8x32xf32>
    %541 = arith.addf %540, %539 : vector<8x32xf32>
    %542 = arith.divf %540, %541 : vector<8x32xf32>
    %cst_133 = arith.constant 2.000000e+00 : f32
    %543 = vector.broadcast %cst_133 : f32 to vector<8x32xf32>
    %544 = arith.mulf %543, %542 : vector<8x32xf32>
    %cst_134 = arith.constant 1.000000e+00 : f32
    %545 = vector.broadcast %cst_134 : f32 to vector<8x32xf32>
    %546 = arith.subf %544, %545 : vector<8x32xf32>
    %547 = arith.mulf %532, %546 : vector<8x32xf32>
    %548 = arith.select %47, %547, %516 : vector<8x32xi1>, vector<8x32xf32>
    %549 = arith.select %47, %535, %517 : vector<8x32xi1>, vector<8x32xf32>
    %cst_135 = arith.constant dense<0.000000e+00> : vector<8x128xf32>
    %550 = tpu.matmul %548, %387, %cst_135 {dimension_numbers = #tpu.dot_dimension_numbers<[1], [0], [0], [1], [0, 0, 1, 1], [], []>} : vector<8x32xf32>, vector<32x128xf32>, vector<8x128xf32> -> vector<8x128xf32>
    %551 = arith.addf %380, %550 : vector<8x128xf32>
    %552 = arith.negf %551 : vector<8x128xf32>
    %553 = math.exp %552 : vector<8x128xf32>
    %cst_136 = arith.constant 1.000000e+00 : f32
    %554 = vector.broadcast %cst_136 : f32 to vector<8x128xf32>
    %555 = arith.addf %554, %553 : vector<8x128xf32>
    %556 = arith.divf %554, %555 : vector<8x128xf32>
    %557 = vector.extract_strided_slice %556 {offsets = [0, 0], sizes = [8, 32], strides = [1, 1]} : vector<8x128xf32> to vector<8x32xf32>
    %558 = vector.extract_strided_slice %556 {offsets = [0, 32], sizes = [8, 32], strides = [1, 1]} : vector<8x128xf32> to vector<8x32xf32>
    %559 = vector.extract_strided_slice %556 {offsets = [0, 64], sizes = [8, 32], strides = [1, 1]} : vector<8x128xf32> to vector<8x32xf32>
    %cst_137 = arith.constant 2.000000e+00 : f32
    %560 = vector.broadcast %cst_137 : f32 to vector<8x32xf32>
    %561 = arith.mulf %560, %559 : vector<8x32xf32>
    %cst_138 = arith.constant 1.000000e+00 : f32
    %562 = vector.broadcast %cst_138 : f32 to vector<8x32xf32>
    %563 = arith.subf %561, %562 : vector<8x32xf32>
    %564 = vector.extract_strided_slice %556 {offsets = [0, 96], sizes = [8, 32], strides = [1, 1]} : vector<8x128xf32> to vector<8x32xf32>
    %565 = arith.mulf %558, %549 : vector<8x32xf32>
    %566 = arith.mulf %557, %563 : vector<8x32xf32>
    %567 = arith.addf %565, %566 : vector<8x32xf32>
    %cst_139 = arith.constant 2.000000e+00 : f32
    %568 = vector.broadcast %cst_139 : f32 to vector<8x32xf32>
    %569 = arith.mulf %568, %567 : vector<8x32xf32>
    %570 = arith.negf %569 : vector<8x32xf32>
    %571 = math.exp %570 : vector<8x32xf32>
    %cst_140 = arith.constant 1.000000e+00 : f32
    %572 = vector.broadcast %cst_140 : f32 to vector<8x32xf32>
    %573 = arith.addf %572, %571 : vector<8x32xf32>
    %574 = arith.divf %572, %573 : vector<8x32xf32>
    %cst_141 = arith.constant 2.000000e+00 : f32
    %575 = vector.broadcast %cst_141 : f32 to vector<8x32xf32>
    %576 = arith.mulf %575, %574 : vector<8x32xf32>
    %cst_142 = arith.constant 1.000000e+00 : f32
    %577 = vector.broadcast %cst_142 : f32 to vector<8x32xf32>
    %578 = arith.subf %576, %577 : vector<8x32xf32>
    %579 = arith.mulf %564, %578 : vector<8x32xf32>
    %580 = arith.select %52, %579, %548 : vector<8x32xi1>, vector<8x32xf32>
    %581 = arith.select %52, %567, %549 : vector<8x32xi1>, vector<8x32xf32>
    %cst_143 = arith.constant dense<0.000000e+00> : vector<8x128xf32>
    %582 = tpu.matmul %580, %387, %cst_143 {dimension_numbers = #tpu.dot_dimension_numbers<[1], [0], [0], [1], [0, 0, 1, 1], [], []>} : vector<8x32xf32>, vector<32x128xf32>, vector<8x128xf32> -> vector<8x128xf32>
    %583 = arith.addf %383, %582 : vector<8x128xf32>
    %584 = arith.negf %583 : vector<8x128xf32>
    %585 = math.exp %584 : vector<8x128xf32>
    %cst_144 = arith.constant 1.000000e+00 : f32
    %586 = vector.broadcast %cst_144 : f32 to vector<8x128xf32>
    %587 = arith.addf %586, %585 : vector<8x128xf32>
    %588 = arith.divf %586, %587 : vector<8x128xf32>
    %589 = vector.extract_strided_slice %588 {offsets = [0, 0], sizes = [8, 32], strides = [1, 1]} : vector<8x128xf32> to vector<8x32xf32>
    %590 = vector.extract_strided_slice %588 {offsets = [0, 32], sizes = [8, 32], strides = [1, 1]} : vector<8x128xf32> to vector<8x32xf32>
    %591 = vector.extract_strided_slice %588 {offsets = [0, 64], sizes = [8, 32], strides = [1, 1]} : vector<8x128xf32> to vector<8x32xf32>
    %cst_145 = arith.constant 2.000000e+00 : f32
    %592 = vector.broadcast %cst_145 : f32 to vector<8x32xf32>
    %593 = arith.mulf %592, %591 : vector<8x32xf32>
    %cst_146 = arith.constant 1.000000e+00 : f32
    %594 = vector.broadcast %cst_146 : f32 to vector<8x32xf32>
    %595 = arith.subf %593, %594 : vector<8x32xf32>
    %596 = vector.extract_strided_slice %588 {offsets = [0, 96], sizes = [8, 32], strides = [1, 1]} : vector<8x128xf32> to vector<8x32xf32>
    %597 = arith.mulf %590, %581 : vector<8x32xf32>
    %598 = arith.mulf %589, %595 : vector<8x32xf32>
    %599 = arith.addf %597, %598 : vector<8x32xf32>
    %cst_147 = arith.constant 2.000000e+00 : f32
    %600 = vector.broadcast %cst_147 : f32 to vector<8x32xf32>
    %601 = arith.mulf %600, %599 : vector<8x32xf32>
    %602 = arith.negf %601 : vector<8x32xf32>
    %603 = math.exp %602 : vector<8x32xf32>
    %cst_148 = arith.constant 1.000000e+00 : f32
    %604 = vector.broadcast %cst_148 : f32 to vector<8x32xf32>
    %605 = arith.addf %604, %603 : vector<8x32xf32>
    %606 = arith.divf %604, %605 : vector<8x32xf32>
    %cst_149 = arith.constant 2.000000e+00 : f32
    %607 = vector.broadcast %cst_149 : f32 to vector<8x32xf32>
    %608 = arith.mulf %607, %606 : vector<8x32xf32>
    %cst_150 = arith.constant 1.000000e+00 : f32
    %609 = vector.broadcast %cst_150 : f32 to vector<8x32xf32>
    %610 = arith.subf %608, %609 : vector<8x32xf32>
    %611 = arith.mulf %596, %610 : vector<8x32xf32>
    %612 = arith.select %57, %611, %580 : vector<8x32xi1>, vector<8x32xf32>
    %613 = arith.select %57, %599, %581 : vector<8x32xi1>, vector<8x32xf32>
    %cst_151 = arith.constant dense<0.000000e+00> : vector<8x128xf32>
    %614 = tpu.matmul %612, %387, %cst_151 {dimension_numbers = #tpu.dot_dimension_numbers<[1], [0], [0], [1], [0, 0, 1, 1], [], []>} : vector<8x32xf32>, vector<32x128xf32>, vector<8x128xf32> -> vector<8x128xf32>
    %615 = arith.addf %386, %614 : vector<8x128xf32>
    %616 = arith.negf %615 : vector<8x128xf32>
    %617 = math.exp %616 : vector<8x128xf32>
    %cst_152 = arith.constant 1.000000e+00 : f32
    %618 = vector.broadcast %cst_152 : f32 to vector<8x128xf32>
    %619 = arith.addf %618, %617 : vector<8x128xf32>
    %620 = arith.divf %618, %619 : vector<8x128xf32>
    %621 = vector.extract_strided_slice %620 {offsets = [0, 0], sizes = [8, 32], strides = [1, 1]} : vector<8x128xf32> to vector<8x32xf32>
    %622 = vector.extract_strided_slice %620 {offsets = [0, 32], sizes = [8, 32], strides = [1, 1]} : vector<8x128xf32> to vector<8x32xf32>
    %623 = vector.extract_strided_slice %620 {offsets = [0, 64], sizes = [8, 32], strides = [1, 1]} : vector<8x128xf32> to vector<8x32xf32>
    %cst_153 = arith.constant 2.000000e+00 : f32
    %624 = vector.broadcast %cst_153 : f32 to vector<8x32xf32>
    %625 = arith.mulf %624, %623 : vector<8x32xf32>
    %cst_154 = arith.constant 1.000000e+00 : f32
    %626 = vector.broadcast %cst_154 : f32 to vector<8x32xf32>
    %627 = arith.subf %625, %626 : vector<8x32xf32>
    %628 = vector.extract_strided_slice %620 {offsets = [0, 96], sizes = [8, 32], strides = [1, 1]} : vector<8x128xf32> to vector<8x32xf32>
    %629 = arith.mulf %622, %613 : vector<8x32xf32>
    %630 = arith.mulf %621, %627 : vector<8x32xf32>
    %631 = arith.addf %629, %630 : vector<8x32xf32>
    %cst_155 = arith.constant 2.000000e+00 : f32
    %632 = vector.broadcast %cst_155 : f32 to vector<8x32xf32>
    %633 = arith.mulf %632, %631 : vector<8x32xf32>
    %634 = arith.negf %633 : vector<8x32xf32>
    %635 = math.exp %634 : vector<8x32xf32>
    %cst_156 = arith.constant 1.000000e+00 : f32
    %636 = vector.broadcast %cst_156 : f32 to vector<8x32xf32>
    %637 = arith.addf %636, %635 : vector<8x32xf32>
    %638 = arith.divf %636, %637 : vector<8x32xf32>
    %cst_157 = arith.constant 2.000000e+00 : f32
    %639 = vector.broadcast %cst_157 : f32 to vector<8x32xf32>
    %640 = arith.mulf %639, %638 : vector<8x32xf32>
    %cst_158 = arith.constant 1.000000e+00 : f32
    %641 = vector.broadcast %cst_158 : f32 to vector<8x32xf32>
    %642 = arith.subf %640, %641 : vector<8x32xf32>
    %643 = arith.mulf %628, %642 : vector<8x32xf32>
    %644 = arith.select %3, %419, %643 : vector<8x32xi1>, vector<8x32xf32>
    %645 = arith.select %3, %451, %611 : vector<8x32xi1>, vector<8x32xf32>
    %646 = arith.select %3, %483, %579 : vector<8x32xi1>, vector<8x32xf32>
    %647 = arith.select %3, %515, %547 : vector<8x32xi1>, vector<8x32xf32>
    %648 = arith.select %3, %547, %515 : vector<8x32xi1>, vector<8x32xf32>
    %649 = arith.select %3, %579, %483 : vector<8x32xi1>, vector<8x32xf32>
    %650 = arith.select %3, %611, %451 : vector<8x32xi1>, vector<8x32xf32>
    %651 = arith.select %3, %643, %419 : vector<8x32xi1>, vector<8x32xf32>
    %652 = tpu.concatenate %644, %645, %646, %647, %648, %649, %650, %651 in 0 : vector<8x32xf32>, vector<8x32xf32>, vector<8x32xf32>, vector<8x32xf32>, vector<8x32xf32>, vector<8x32xf32>, vector<8x32xf32>, vector<8x32xf32> -> vector<64x32xf32>
    %653 = vector.broadcast %0 : vector<64x1xf32> to vector<64x32xf32>
    %654 = arith.mulf %652, %653 : vector<64x32xf32>
    %c0_159 = arith.constant 0 : index
    %c0_160 = arith.constant 0 : index
    %655 = vector.load %arg2[%c0_159, %c0_160] : memref<8x64xf32, #tpu.memory_space<vmem>>, vector<8x64xf32>
    %cst_161 = arith.constant dense<0.000000e+00> : vector<8x32xf32>
    %656 = tpu.matmul %655, %654, %cst_161 {dimension_numbers = #tpu.dot_dimension_numbers<[1], [0], [0], [1], [0, 0, 1, 1], [], []>} : vector<8x64xf32>, vector<64x32xf32>, vector<8x32xf32> -> vector<8x32xf32>
    %c0_162 = arith.constant 0 : index
    %c0_163 = arith.constant 0 : index
    %657 = vector.load %arg9[%c0_162, %c0_163] : memref<32x2xf32, #tpu.memory_space<vmem>>, vector<32x2xf32>
    %cst_164 = arith.constant dense<0.000000e+00> : vector<8x2xf32>
    %658 = tpu.matmul %656, %657, %cst_164 {dimension_numbers = #tpu.dot_dimension_numbers<[1], [0], [0], [1], [0, 0, 1, 1], [], []>} : vector<8x32xf32>, vector<32x2xf32>, vector<8x2xf32> -> vector<8x2xf32>
    %c0_165 = arith.constant 0 : index
    %c0_166 = arith.constant 0 : index
    %659 = vector.load %arg10[%c0_165, %c0_166] : memref<1x2xf32, #tpu.memory_space<vmem>>, vector<1x2xf32>
    %660 = vector.broadcast %659 : vector<1x2xf32> to vector<8x2xf32>
    %661 = arith.addf %658, %660 : vector<8x2xf32>
    %c0_167 = arith.constant 0 : index
    %c0_168 = arith.constant 0 : index
    %662 = vector.load %arg11[%c0_167, %c0_168] : memref<8x2xf32, #tpu.memory_space<vmem>>, vector<8x2xf32>
    tpu.vector_store %arg11[%c0_167, %c0_168], %661 {strides = array<i32>} : memref<8x2xf32, #tpu.memory_space<vmem>>, vector<8x2xf32>,
    return
  }
}

</mosaic_0001>

<bundles_post_ra>
// kernel: lstm_forward.1
= control target key start
LH: loop header
LB: loop body
LE: loop exit
PB: predicated region body
PF: predicated region fallthrough
CT: control target
= control target key end

     0   :  { %v3189_v1 = vmov 0.0|0.0   ;;  %vm3190_vm0 = vmmov 0   ;;  %v3191_v2 = vmov 0.0   ;;  %vm147_vm1 = vcmask 261120   ;;  %s3193_s25 = smov 32   ;;  %s3195_s28 = smov 96   ;;  %s4036_s3 = inlined_call_operand.vmem [shape: bf16[32,128], index: 3, kind: input, shape index: {}]   ;;  %s4037_s0 = inlined_call_operand.vmem [shape: f32[64,32], index: 0, kind: input, shape index: {}]   ;;  %s4038_s4 = inlined_call_operand.vmem [shape: f32[32,128], index: 4, kind: input, shape index: {}]   ;;  %s4039_s5 = inlined_call_operand.vmem [shape: f32[1,128], index: 5, kind: input, shape index: {}]   ;;  %s4040_s1 = inlined_call_operand.vmem [shape: f32[64,1], index: 1, kind: input, shape index: {}]   ;;  %s4041_s6 = inlined_call_operand.vmem [shape: bf16[32,128], index: 6, kind: input, shape index: {}]   ;;  %s4042_s7 = inlined_call_operand.vmem [shape: f32[32,128], index: 7, kind: input, shape index: {}]   ;;  %s4043_s8 = inlined_call_operand.vmem [shape: f32[1,128], index: 8, kind: input, shape index: {}]   ;;  %s4044_s9 = inlined_call_operand.vmem [shape: f32[32,2], index: 9, kind: input, shape index: {}]   ;;  %s4045_s2 = inlined_call_operand.vmem [shape: f32[8,64], index: 2, kind: input, shape index: {}]   ;;  %s4046_s10 = inlined_call_operand.vmem [shape: f32[1,2], index: 10, kind: input, shape index: {}]   ;;  %s4047_s11 = inlined_call_operand.vmem [shape: f32[8,2], index: 11, kind: output, shape index: {}]  }
   0x1   :  { %v3057_v0 = vld [vmem:[%s4036_s3] sm:$0xff]   ;;  %2934 = vmatprep.subr.bf16.mxu1 %v3189_v1  ;;  %2724 = vmatprep.mubr.msk.f32.mxu1 %vm3190_vm0, %v3191_v2  ;;  %v3058_v3 = vld [vmem:[%s4036_s3 + $0x8] sm:$0xff]   ;;  %v114_v6 = vld [vmem:[%s4037_s0 + $0x10] sm:$0xff]  ;;  %v47_v22 = vlaneseq  ;;  %v3194_v62 = vmov 0  }
   0x2   :  { %2704 = vmatprep.subr.bf16.mxu0 %v3057_v0  ;;  %v112_v4 = vld [vmem:[%s4037_s0] sm:$0xff]  ;;  %v113_v5 = vld [vmem:[%s4037_s0 + $0x8] sm:$0xff]  ;;  %v115_v8 = vld [vmem:[%s4037_s0 + $0x18] sm:$0xff]  ;;  %3055 = vset.pattern.permute.xlu1 %v3194_v62 }
   0x3   :  { %2705 = vmatpush3.bf16.msra.mxu0 %v3057_v0  ;;  %v120_v7 = vpack.c.bf16 %v113_v5, %v112_v4  ;;  %v233_v9 = vld [vmem:[%s4038_s4] sm:$0xff]  ;;  %v234_v10 = vld [vmem:[%s4038_s4 + $0x8] sm:$0xff]  ;;  %v235_v14 = vld [vmem:[%s4038_s4 + $0x10] sm:$0xff]  ;;  %v121_v16 = vpack.c.bf16 %v115_v8, %v114_v6  ;;  %v3330_v25 = vand.u32 127, %v47_v22  ;;  %3056 = vset.pattern.permute.xlu0 %v3194_v62 }
   0x4   :  { %2706 = vmatprep.subr.bf16.mxu0 %v3058_v3  ;;  %v3283_v11 = vpack.c.bf16 %v234_v10, %v233_v9  ;;  %v116_v12 = vld [vmem:[%s4037_s0 + $0x20] sm:$0xff]  ;;  %v117_v13 = vld [vmem:[%s4037_s0 + $0x28] sm:$0xff]  ;;  %v236_v15 = vld [vmem:[%s4038_s4 + $0x18] sm:$0xff] }
   0x5   :  { %2708 = vmatprep.mubr.msk.bf16.mxu0 %vm147_vm1, %v120_v7  ;;  %v3299_v17 = vpack.c.bf16 %v236_v15, %v235_v14  ;;  %v122_v18 = vpack.c.bf16 %v117_v13, %v116_v12  ;;  %v118_v19 = vld [vmem:[%s4037_s0 + $0x30] sm:$0xff]  ;;  %v119_v20 = vld [vmem:[%s4037_s0 + $0x38] sm:$0xff]  ;;  %v2503_v23 = vld [vmem:[%s4039_s5] ss:$0 sm:$0xff]  ;;  %v54_v33 = vand.u32 31, %v3330_v25  ;;  %s3192_s5 = smov 64  }
   0x6   :  { %2936 = vmatpush3.bf16.msra.mxu1 %v3283_v11  ;;  %v123_v21 = vpack.c.bf16 %v119_v20, %v118_v19  ;;  %v3392_v9 = vld [vmem:[%s4040_s1 + $0x38] sm:$0xff]  ;;  %vm49_vm4 = vcmp.lt.s32.totalorder %v3330_v25, 16 }
   0x7   :  { %2707 = vmatpush3.bf16.msra.mxu0 %v3058_v3  ;;  %2937 = vmatprep.subr.bf16.mxu1 %v3189_v1  ;;  %vm3339_vm2 = vcmp.lt.s32.totalorder %v54_v33, 16  ;;  %vm63_vm3 = vcmp.gt.f32.partialorder %v3392_v9, 0.0 }
   0x8   :  { %2946 = vmatprep.subr.bf16.mxu0 %v3189_v1  ;;  %v64_v13 = vsel %vm63_vm3, 1, %v3194_v62 }
   0xa   :  { %2709 = vmatmul.mubr.msk.bf16.vlgmr.msra.gmra.mrb[0].mxu0 %vm147_vm1, %v121_v16  ;;  %2939 = vmatpush3.bf16.msra.mxu1 %v3299_v17 }
   0xb   :  { %2712 = vmatprep.mubr.msk.bf16.mxu0 %vm147_vm1, %v122_v18  ;;  %2940 = vmatprep.subr.bf16.mxu1 %v3189_v1 }
   0xc   :  { %2948 = vmatpush3.bf16.msra.mxu0 %v3283_v11 }
   0xd   :  { %2725 = vmatmul.mubr.f32.vlgmr.msra.gmra.mrb[0].mxu1 %v3191_v2  ;;  %2949 = vmatprep.subr.bf16.mxu0 %v3189_v1 }
   0xe   :  { %2942 = vmatpush3.bf16.msra.mxu1 %v3283_v11  ;;  %2735 = vmatprep.mubr.msk.f32.mxu1 %vm3190_vm0, %v3191_v2 }
   0xf   :  { %2943 = vmatprep.subr.bf16.mxu1 %v3189_v1 }
  0x10   :  { %2951 = vmatpush3.bf16.msra.mxu0 %v3299_v17 }
  0x11   :  { %2958 = vmatprep.subr.bf16.mxu0 %v3189_v1 }
  0x12   :  { %2713 = vmatmul.mubr.msk.bf16.gmra.mrb[4].mxu0 %vm147_vm1, %v123_v21  ;;  %2945 = vmatpush3.bf16.msra.mxu1 %v3299_v17 }
  0x13   :  { %2746 = vmatprep.mubr.msk.f32.mxu0 %vm3190_vm0, %v3191_v2  ;;  %2952 = vmatprep.subr.bf16.mxu1 %v3189_v1 }
  0xdd   :  { %v2710_v24 = vpop.f32.mrb[0].mxu0 }
  0xde   :  { %v3332_v26 = vadd.f32 %v2710_v24, %v2503_v23  ;;  %v194_v27 = vpop.f32.mrb[1].mxu0 }
  0xdf   :  { %v2711_v28 = vpop.f32.mrb[2].mxu0  ;;  %v3347_v41 = vadd.f32 %v2503_v23, %v194_v27 }
  0xe0   :  { %v3334_v29 = vadd.f32 %v2711_v28, %v2503_v23  ;;  %v197_v30 = vpop.f32.mrb[3].mxu0  ;;  %v306_v31 = vpop.f32.mrb[0].mxu1 }
  0xe1   :  { %v3336_v32 = vadd.f32 %v2503_v23, %v197_v30  ;;  %v2726_v34 = vpop.f32.mrb[1].mxu1 }
  0xe5   :  { %v2714_v35 = vpop.f32.mrb[4].mxu0 }
  0xe6   :  { %v3343_v37 = vadd.f32 %v2714_v35, %v2503_v23  ;;  %v210_v38 = vpop.f32.mrb[5].mxu0 }
  0xe7   :  { %v3345_v39 = vadd.f32 %v2503_v23, %v210_v38  ;;  %v2715_v40 = vpop.f32.mrb[6].mxu0 }
  0xe8   :  { %v3349_v42 = vadd.f32 %v2715_v40, %v2503_v23  ;;  %v213_v43 = vpop.f32.mrb[7].mxu0  ;;  %v226_v44 = vsel %vm3339_vm2, %v3336_v32, %v3343_v37  ;;  %v231_v45 = vsel %vm3339_vm2, %v3343_v37, %v3336_v32 }
  0xe9   :  { %v3359_v46 = vadd.f32 %v2503_v23, %v213_v43  ;;  %v228_v47 = vsel %vm3339_vm2, %v3334_v29, %v3345_v39  ;;  %v229_v48 = vsel %vm3339_vm2, %v3345_v39, %v3334_v29  ;;  %v3431_v43 = vld [vmem:[%s4040_s1 + $0x30] sm:$0xff] }
  0xea   :  { %v225_v49 = vsel %vm3339_vm2, %v3347_v41, %v3349_v42  ;;  %v232_v50 = vsel %vm3339_vm2, %v3349_v42, %v3347_v41  ;;  %vm70_vm7 = vcmp.gt.f32.partialorder %v3431_v43, 0.0  ;;  %v39_v41 = vld [vmem:[%s4040_s1] sm:$0xff] }
  0xeb   :  { %v310_v51 = vadd.f32 %v306_v31, %v225_v49  ;;  %v227_v52 = vsel %vm3339_vm2, %v3332_v26, %v3359_v46  ;;  %v230_v53 = vsel %vm3339_vm2, %v3359_v46, %v3332_v26 }
  0xed   :  { %v2510_v54 = vmul.f32 -1.442695, %v310_v51 }
  0xef   :  { %3061 = vpow2.f32 %v2510_v54 }
  0xf9   :  { %v3062_v55 = vpop.eup %3061 }
  0xfa   :  { %v314_v56 = vadd.f32 1.0, %v3062_v55 }
  0xfc   :  { %3063 = vrcp.f32 %v314_v56 }
 0x106   :  { %v3064_v57 = vpop.eup %3063 }
 0x107   :  { %v317_v58 = vmul.f32 2.0, %v3064_v57  ;;  %v319_v63 = vmul.f32 0.0, %v3064_v57 }
 0x109   :  { %v2511_v59 = vadd.f32 -1.0, %v317_v58 }
 0x10b   :  { %321 = vrot.lane.b32.xlu0 %v2511_v59, %s3192_s5 }
 0x17d   :  { %v322_v60 = vpop.permute.xlu0 %321 }
 0x17e   :  { %v324_v61 = vmul.f32 %v3064_v57, %v322_v60 }
 0x180   :  { %326 = vrot.lane.b32.xlu0 %v324_v61, %s3193_s25 }
 0x1f2   :  { %v327_v0 = vpop.permute.xlu0 %326 }
 0x1f3   :  { %v329_v3 = vadd.f32 %v327_v0, %v319_v63 }
 0x1f5   :  { %v2512_v4 = vmul.f32 -2.0, %v329_v3 }
 0x1f7   :  { %v332_v5 = vmul.f32 1.442695, %v2512_v4 }
 0x1f9   :  { %3065 = vpow2.f32 %v332_v5 }
 0x203   :  { %v3066_v6 = vpop.eup %3065 }
 0x204   :  { %v334_v7 = vadd.f32 1.0, %v3066_v6 }
 0x206   :  { %3067 = vrcp.f32 %v334_v7 }
 0x210   :  { %v3068_v8 = vpop.eup %3067 }
 0x211   :  { %v337_v10 = vmul.f32 2.0, %v3068_v8 }
 0x213   :  { %v2513_v12 = vadd.f32 -1.0, %v337_v10 }
 0x215   :  { %340 = vrot.lane.b32.xlu1 %v2513_v12, %s3192_s5 }
 0x219   :  { %66 = vperm.xlu1 %3055, %v64_v13  }
 0x21d   :  { %350 = vrot.lane.b32.xlu1 %v329_v3, %s3195_s28 }
 0x287   :  { %v341_v14 = vpop.permute.xlu1 %340 }
 0x288   :  { %v343_v15 = vmul.f32 %v3064_v57, %v341_v14 }
 0x28a   :  { %345 = vrot.lane.b32.xlu0 %v343_v15, %s3193_s25 }
 0x298   :  { %v67_v16 = vpop.permute.xlu1 %66 }
 0x299   :  { %vm68_vm5 = vcmp.eq.s32.totalorder %v67_v16, 1 }
 0x29a   :  { %vm3402_vm6 = vmor %vm49_vm4, %vm68_vm5 }
 0x29c   :  { %v351_v19 = vpop.permute.xlu1 %350 }
 0x29d   :  { %v353_v20 = vsel %vm3402_vm6, %v351_v19, 0.0 }
 0x29e   :  { %437 = vrot.lane.b32.xlu1 %v353_v20, %s3193_s25 }
 0x2fc   :  { %v3409_v21 = vpop.permute.xlu0 %345 }
 0x2fd   :  { %v348_v22 = vsel %vm3402_vm6, %v3409_v21, 0.0 }
 0x2fe   :  { %2736 = vmatmul.mubr.msk.f32.vlgmr.msra.gmra.mrb[2].mxu1 %vm147_vm1, %v348_v22 }
 0x2ff   :  { %2954 = vmatpush3.bf16.msra.mxu1 %v3283_v11  ;;  %2757 = vmatprep.mubr.msk.f32.mxu1 %vm3190_vm0, %v3191_v2 }
 0x300   :  { %2955 = vmatprep.subr.bf16.mxu1 %v3189_v1 }
 0x303   :  { %2957 = vmatpush3.bf16.msra.mxu1 %v3299_v17 }
 0x304   :  { %2964 = vmatprep.subr.bf16.mxu1 %v3189_v1 }
 0x310   :  { %v438_v49 = vpop.permute.xlu1 %437 }
 0x3d1   :  { %v423_v23 = vpop.f32.mrb[2].mxu1 }
 0x3d2   :  { %v427_v24 = vadd.f32 %v423_v23, %v226_v44  ;;  %v2737_v27 = vpop.f32.mrb[3].mxu1  ;;  %v71_v44 = vsel %vm70_vm7, 1, %v3194_v62 }
 0x3d4   :  { %v2515_v28 = vmul.f32 -1.442695, %v427_v24  ;;  %v3468_v24 = vld [vmem:[%s4040_s1 + $0x28] sm:$0xff] }
 0x3d5   :  { %vm77_vm10 = vcmp.gt.f32.partialorder %v3468_v24, 0.0 }
 0x3d6   :  { %3069 = vpow2.f32 %v2515_v28 }
 0x3e0   :  { %v3070_v30 = vpop.eup %3069 }
 0x3e1   :  { %v431_v31 = vadd.f32 1.0, %v3070_v30 }
 0x3e3   :  { %3071 = vrcp.f32 %v431_v31 }
 0x3ed   :  { %v3072_v33 = vpop.eup %3071 }
 0x3ee   :  { %v434_v34 = vmul.f32 2.0, %v3072_v33  ;;  %v440_v51 = vmul.f32 %v3072_v33, %v438_v49 }
 0x3f0   :  { %v2516_v35 = vadd.f32 -1.0, %v434_v34 }
 0x3f2   :  { %442 = vrot.lane.b32.xlu0 %v2516_v35, %s3192_s5 }
 0x464   :  { %v443_v38 = vpop.permute.xlu0 %442 }
 0x465   :  { %v445_v40 = vmul.f32 %v3072_v33, %v443_v38 }
 0x467   :  { %447 = vrot.lane.b32.xlu0 %v445_v40, %s3193_s25 }
 0x46b   :  { %73 = vperm.xlu0 %3056, %v71_v44  }
 0x4d9   :  { %v448_v54 = vpop.permute.xlu0 %447 }
 0x4da   :  { %v450_v55 = vadd.f32 %v448_v54, %v440_v51 }
 0x4dc   :  { %v2517_v56 = vmul.f32 -2.0, %v450_v55 }
 0x4de   :  { %v453_v57 = vmul.f32 1.442695, %v2517_v56 }
 0x4e0   :  { %3073 = vpow2.f32 %v453_v57 }
 0x4ea   :  { %v3074_v58 = vpop.eup %3073  ;;  %v74_v4 = vpop.permute.xlu0 %73 }
 0x4eb   :  { %v455_v59 = vadd.f32 1.0, %v3074_v58  ;;  %vm75_vm8 = vcmp.eq.s32.totalorder %v74_v4, 1 }
 0x4ec   :  { %vm3440_vm9 = vmor %vm49_vm4, %vm75_vm8 }
 0x4ed   :  { %3075 = vrcp.f32 %v455_v59 }
 0x4f7   :  { %v3076_v60 = vpop.eup %3075 }
 0x4f8   :  { %v458_v61 = vmul.f32 2.0, %v3076_v60 }
 0x4fa   :  { %v2518_v63 = vadd.f32 -1.0, %v458_v61 }
 0x4fc   :  { %461 = vrot.lane.b32.xlu1 %v2518_v63, %s3192_s5 }
 0x56e   :  { %v462_v0 = vpop.permute.xlu1 %461 }
 0x56f   :  { %v464_v3 = vmul.f32 %v3072_v33, %v462_v0 }
 0x571   :  { %466 = vrot.lane.b32.xlu1 %v464_v3, %s3193_s25 }
 0x575   :  { %471 = vrot.lane.b32.xlu1 %v450_v55, %s3195_s28 }
 0x5e3   :  { %v3444_v6 = vpop.permute.xlu1 %466 }
 0x5e4   :  { %v469_v7 = vsel %vm3440_vm9, %v3444_v6, %v348_v22 }
 0x5e5   :  { %2747 = vmatmul.mubr.msk.f32.vlgmr.msra.gmra.mrb[8].mxu0 %vm147_vm1, %v469_v7 }
 0x5e6   :  { %2960 = vmatpush3.bf16.msra.mxu0 %v3283_v11  ;;  %2768 = vmatprep.mubr.msk.f32.mxu0 %vm3190_vm0, %v3191_v2 }
 0x5e7   :  { %v472_v8 = vpop.permute.xlu1 %471  ;;  %2961 = vmatprep.subr.bf16.mxu0 %v3189_v1 }
 0x5e8   :  { %v474_v10 = vsel %vm3440_vm9, %v472_v8, %v353_v20 }
 0x5e9   :  { %558 = vrot.lane.b32.xlu1 %v474_v10, %s3193_s25 }
 0x5ea   :  { %2963 = vmatpush3.bf16.msra.mxu0 %v3299_v17 }
 0x5eb   :  { %2970 = vmatprep.subr.bf16.mxu0 %v3189_v1 }
 0x65b   :  { %v559_v30 = vpop.permute.xlu1 %558 }
 0x6b8   :  { %v544_v12 = vpop.f32.mrb[8].mxu0 }
 0x6b9   :  { %v548_v13 = vadd.f32 %v544_v12, %v227_v52  ;;  %v2748_v14 = vpop.f32.mrb[9].mxu0  ;;  %v78_v52 = vsel %vm77_vm10, 1, %v3194_v62 }
 0x6bb   :  { %v2520_v15 = vmul.f32 -1.442695, %v548_v13 }
 0x6bd   :  { %3077 = vpow2.f32 %v2520_v15  ;;  %v3506_v15 = vld [vmem:[%s4040_s1 + $0x20] sm:$0xff] }
 0x6be   :  { %vm84_vm13 = vcmp.gt.f32.partialorder %v3506_v15, 0.0 }
 0x6c7   :  { %v3078_v16 = vpop.eup %3077 }
 0x6c8   :  { %v552_v19 = vadd.f32 1.0, %v3078_v16 }
 0x6ca   :  { %3079 = vrcp.f32 %v552_v19 }
 0x6d4   :  { %v3080_v20 = vpop.eup %3079 }
 0x6d5   :  { %v555_v22 = vmul.f32 2.0, %v3080_v20  ;;  %v561_v31 = vmul.f32 %v3080_v20, %v559_v30 }
 0x6d7   :  { %v2521_v23 = vadd.f32 -1.0, %v555_v22 }
 0x6d9   :  { %563 = vrot.lane.b32.xlu0 %v2521_v23, %s3192_s5 }
 0x74b   :  { %v564_v27 = vpop.permute.xlu0 %563 }
 0x74c   :  { %v566_v28 = vmul.f32 %v3080_v20, %v564_v27 }
 0x74e   :  { %568 = vrot.lane.b32.xlu0 %v566_v28, %s3193_s25 }
 0x752   :  { %80 = vperm.xlu0 %3056, %v78_v52  }
 0x7c0   :  { %v569_v33 = vpop.permute.xlu0 %568 }
 0x7c1   :  { %v571_v34 = vadd.f32 %v569_v33, %v561_v31 }
 0x7c3   :  { %v2522_v35 = vmul.f32 -2.0, %v571_v34  ;;  %592 = vrot.lane.b32.xlu0 %v571_v34, %s3195_s28 }
 0x7c5   :  { %v574_v38 = vmul.f32 1.442695, %v2522_v35 }
 0x7c7   :  { %3081 = vpow2.f32 %v574_v38 }
 0x7d1   :  { %v3082_v40 = vpop.eup %3081  ;;  %v81_v55 = vpop.permute.xlu0 %80 }
 0x7d2   :  { %v576_v44 = vadd.f32 1.0, %v3082_v40  ;;  %vm82_vm11 = vcmp.eq.s32.totalorder %v81_v55, 1 }
 0x7d3   :  { %vm3477_vm12 = vmor %vm49_vm4, %vm82_vm11 }
 0x7d4   :  { %3083 = vrcp.f32 %v576_v44 }
 0x7de   :  { %v3084_v49 = vpop.eup %3083 }
 0x7df   :  { %v579_v51 = vmul.f32 2.0, %v3084_v49 }
 0x7e1   :  { %v2523_v54 = vadd.f32 -1.0, %v579_v51 }
 0x7e3   :  { %582 = vrot.lane.b32.xlu1 %v2523_v54, %s3192_s5 }
 0x835   :  { %v593_v57 = vpop.permute.xlu0 %592 }
 0x836   :  { %v595_v58 = vsel %vm3477_vm12, %v593_v57, %v474_v10 }
 0x837   :  { %679 = vrot.lane.b32.xlu0 %v595_v58, %s3193_s25 }
 0x855   :  { %v583_v59 = vpop.permute.xlu1 %582 }
 0x856   :  { %v585_v60 = vmul.f32 %v3080_v20, %v583_v59 }
 0x858   :  { %587 = vrot.lane.b32.xlu1 %v585_v60, %s3193_s25 }
 0x8a9   :  { %v680_v20 = vpop.permute.xlu0 %679 }
 0x8ca   :  { %v3485_v61 = vpop.permute.xlu1 %587 }
 0x8cb   :  { %v590_v63 = vsel %vm3477_vm12, %v3485_v61, %v469_v7 }
 0x8cc   :  { %2758 = vmatmul.mubr.msk.f32.vlgmr.msra.gmra.mrb[4].mxu1 %vm147_vm1, %v590_v63 }
 0x8cd   :  { %2966 = vmatpush3.bf16.msra.mxu1 %v3283_v11  ;;  %2779 = vmatprep.mubr.msk.f32.mxu1 %vm3190_vm0, %v3191_v2 }
 0x8ce   :  { %2967 = vmatprep.subr.bf16.mxu1 %v3189_v1 }
 0x8d1   :  { %2969 = vmatpush3.bf16.msra.mxu1 %v3299_v17 }
 0x8d2   :  { %2976 = vmatprep.subr.bf16.mxu1 %v3189_v1 }
 0x99f   :  { %v665_v0 = vpop.f32.mrb[4].mxu1 }
 0x9a0   :  { %v669_v3 = vadd.f32 %v665_v0, %v228_v47  ;;  %v2759_v4 = vpop.f32.mrb[5].mxu1  ;;  %v85_v47 = vsel %vm84_vm13, 1, %v3194_v62 }
 0x9a2   :  { %v2525_v7 = vmul.f32 -1.442695, %v669_v3 }
 0x9a4   :  { %3085 = vpow2.f32 %v2525_v7 }
 0x9ae   :  { %v3086_v8 = vpop.eup %3085 }
 0x9af   :  { %v673_v10 = vadd.f32 1.0, %v3086_v8 }
 0x9b1   :  { %3087 = vrcp.f32 %v673_v10  ;;  %v3543_v10 = vld [vmem:[%s4040_s1 + $0x18] sm:$0xff] }
 0x9b2   :  { %vm91_vm3 = vcmp.gt.f32.partialorder %v3543_v10, 0.0 }
 0x9b3   :  { %v92_v29 = vsel %vm91_vm3, 1, %v3194_v62 }
 0x9bb   :  { %v3088_v12 = vpop.eup %3087 }
 0x9bc   :  { %v676_v13 = vmul.f32 2.0, %v3088_v12  ;;  %v682_v22 = vmul.f32 %v3088_v12, %v680_v20 }
 0x9be   :  { %v2526_v14 = vadd.f32 -1.0, %v676_v13 }
 0x9c0   :  { %684 = vrot.lane.b32.xlu1 %v2526_v14, %s3192_s5 }
 0xa32   :  { %v685_v16 = vpop.permute.xlu1 %684 }
 0xa33   :  { %v687_v19 = vmul.f32 %v3088_v12, %v685_v16 }
 0xa35   :  { %689 = vrot.lane.b32.xlu1 %v687_v19, %s3193_s25 }
 0xa39   :  { %87 = vperm.xlu1 %3055, %v85_v47  }
 0xaa7   :  { %v690_v23 = vpop.permute.xlu1 %689 }
 0xaa8   :  { %v692_v27 = vadd.f32 %v690_v23, %v682_v22 }
 0xaaa   :  { %v2527_v28 = vmul.f32 -2.0, %v692_v27  ;;  %713 = vrot.lane.b32.xlu1 %v692_v27, %s3195_s28 }
 0xaac   :  { %v695_v52 = vmul.f32 1.442695, %v2527_v28 }
 0xaae   :  { %3089 = vpow2.f32 %v695_v52 }
 0xab8   :  { %v3090_v30 = vpop.eup %3089  ;;  %v88_v38 = vpop.permute.xlu1 %87 }
 0xab9   :  { %v697_v31 = vadd.f32 1.0, %v3090_v30  ;;  %vm89_vm14 = vcmp.eq.s32.totalorder %v88_v38, 1 }
 0xaba   :  { %vm3515_vm15 = vmor %vm49_vm4, %vm89_vm14 }
 0xabb   :  { %3091 = vrcp.f32 %v697_v31 }
 0xac5   :  { %v3092_v33 = vpop.eup %3091 }
 0xac6   :  { %v700_v34 = vmul.f32 2.0, %v3092_v33 }
 0xac8   :  { %v2528_v35 = vadd.f32 -1.0, %v700_v34 }
 0xaca   :  { %703 = vrot.lane.b32.xlu0 %v2528_v35, %s3192_s5 }
 0xb1c   :  { %v714_v44 = vpop.permute.xlu1 %713 }
 0xb1d   :  { %v716_v49 = vsel %vm3515_vm15, %v714_v44, %v595_v58 }
 0xb1e   :  { %800 = vrot.lane.b32.xlu1 %v716_v49, %s3193_s25 }
 0xb3c   :  { %v704_v51 = vpop.permute.xlu0 %703 }
 0xb3d   :  { %v706_v54 = vmul.f32 %v3088_v12, %v704_v51 }
 0xb3f   :  { %708 = vrot.lane.b32.xlu0 %v706_v54, %s3193_s25 }
 0xb90   :  { %v801_v39 = vpop.permute.xlu1 %800 }
 0xbb1   :  { %v3523_v55 = vpop.permute.xlu0 %708 }
 0xbb2   :  { %v711_v57 = vsel %vm3515_vm15, %v3523_v55, %v590_v63 }
 0xbb3   :  { %2769 = vmatmul.mubr.msk.f32.vlgmr.msra.gmra.mrb[10].mxu0 %vm147_vm1, %v711_v57 }
 0xbb4   :  { %2972 = vmatpush3.bf16.msra.mxu0 %v3283_v11  ;;  %2790 = vmatprep.mubr.msk.f32.mxu0 %vm3190_vm0, %v3191_v2 }
 0xbb5   :  { %2973 = vmatprep.subr.bf16.mxu0 %v3189_v1 }
 0xbb8   :  { %2975 = vmatpush3.bf16.msra.mxu0 %v3299_v17 }
 0xc86   :  { %v786_v58 = vpop.f32.mrb[10].mxu0 }
 0xc87   :  { %v790_v59 = vadd.f32 %v786_v58, %v229_v48  ;;  %v2770_v60 = vpop.f32.mrb[11].mxu0 }
 0xc89   :  { %v2530_v63 = vmul.f32 -1.442695, %v790_v59 }
 0xc8b   :  { %3093 = vpow2.f32 %v2530_v63 }
 0xc95   :  { %v3094_v0 = vpop.eup %3093 }
 0xc96   :  { %v794_v3 = vadd.f32 1.0, %v3094_v0 }
 0xc98   :  { %3095 = vrcp.f32 %v794_v3 }
 0xca2   :  { %v3096_v4 = vpop.eup %3095 }
 0xca3   :  { %v797_v7 = vmul.f32 2.0, %v3096_v4  ;;  %v803_v48 = vmul.f32 %v3096_v4, %v801_v39 }
 0xca5   :  { %v2531_v8 = vadd.f32 -1.0, %v797_v7 }
 0xca7   :  { %805 = vrot.lane.b32.xlu0 %v2531_v8, %s3192_s5 }
 0xd19   :  { %v806_v12 = vpop.permute.xlu0 %805 }
 0xd1a   :  { %v808_v13 = vmul.f32 %v3096_v4, %v806_v12 }
 0xd1c   :  { %810 = vrot.lane.b32.xlu0 %v808_v13, %s3193_s25 }
 0xd20   :  { %94 = vperm.xlu0 %3056, %v92_v29  }
 0xd8e   :  { %v811_v14 = vpop.permute.xlu0 %810 }
 0xd8f   :  { %v813_v16 = vadd.f32 %v811_v14, %v803_v48 }
 0xd91   :  { %v2532_v19 = vmul.f32 -2.0, %v813_v16  ;;  %834 = vrot.lane.b32.xlu0 %v813_v16, %s3195_s28 }
 0xd93   :  { %v816_v47 = vmul.f32 1.442695, %v2532_v19 }
 0xd95   :  { %3097 = vpow2.f32 %v816_v47 }
 0xd9f   :  { %v3098_v20 = vpop.eup %3097  ;;  %v95_v52 = vpop.permute.xlu0 %94 }
 0xda0   :  { %v818_v22 = vadd.f32 1.0, %v3098_v20  ;;  %vm96_vm5 = vcmp.eq.s32.totalorder %v95_v52, 1 }
 0xda1   :  { %vm3552_vm7 = vmor %vm49_vm4, %vm96_vm5 }
 0xda2   :  { %3099 = vrcp.f32 %v818_v22 }
 0xdac   :  { %v3100_v23 = vpop.eup %3099 }
 0xdad   :  { %v821_v27 = vmul.f32 2.0, %v3100_v23 }
 0xdaf   :  { %v2533_v28 = vadd.f32 -1.0, %v821_v27 }
 0xdb1   :  { %824 = vrot.lane.b32.xlu1 %v2533_v28, %s3192_s5 }
 0xe03   :  { %v835_v31 = vpop.permute.xlu0 %834 }
 0xe04   :  { %v837_v33 = vsel %vm3552_vm7, %v835_v31, %v716_v49 }
 0xe05   :  { %921 = vrot.lane.b32.xlu0 %v837_v33, %s3193_s25 }
 0xe23   :  { %v825_v34 = vpop.permute.xlu1 %824 }
 0xe24   :  { %v827_v35 = vmul.f32 %v3096_v4, %v825_v34 }
 0xe26   :  { %829 = vrot.lane.b32.xlu1 %v827_v35, %s3193_s25 }
 0xe77   :  { %v922_v46 = vpop.permute.xlu0 %921 }
 0xe98   :  { %v3560_v38 = vpop.permute.xlu1 %829 }
 0xe99   :  { %v832_v44 = vsel %vm3552_vm7, %v3560_v38, %v711_v57 }
 0xe9a   :  { %2780 = vmatmul.mubr.msk.f32.vlgmr.msra.gmra.mrb[6].mxu1 %vm147_vm1, %v832_v44 }
 0xe9b   :  { %2978 = vmatpush3.bf16.msra.mxu1 %v3283_v11  ;;  %2801 = vmatprep.mubr.msk.f32.mxu1 %vm3190_vm0, %v3191_v2 }
 0xe9c   :  { %2979 = vmatprep.subr.bf16.mxu1 %v3189_v1 }
 0xe9f   :  { %2981 = vmatpush3.bf16.msra.mxu1 %v3299_v17  ;;  %v3581_v17 = vld [vmem:[%s4040_s1 + $0x10] sm:$0xff] }
 0xea0   :  { %2982 = vmatprep.subr.bf16.mxu1 %v3189_v1  ;;  %vm98_vm8 = vcmp.gt.f32.partialorder %v3581_v17, 0.0 }
 0xea1   :  { %v99_v26 = vsel %vm98_vm8, 1, %v3194_v62 }
 0xf6d   :  { %v907_v49 = vpop.f32.mrb[6].mxu1 }
 0xf6e   :  { %v911_v51 = vadd.f32 %v907_v49, %v230_v53  ;;  %v2781_v54 = vpop.f32.mrb[7].mxu1 }
 0xf70   :  { %v2535_v57 = vmul.f32 -1.442695, %v911_v51 }
 0xf72   :  { %3101 = vpow2.f32 %v2535_v57 }
 0xf7c   :  { %v3102_v11 = vpop.eup %3101 }
 0xf7d   :  { %v915_v58 = vadd.f32 1.0, %v3102_v11 }
 0xf7f   :  { %3103 = vrcp.f32 %v915_v58 }
 0xf89   :  { %v3104_v59 = vpop.eup %3103 }
 0xf8a   :  { %v918_v60 = vmul.f32 2.0, %v3104_v59  ;;  %v924_v53 = vmul.f32 %v3104_v59, %v922_v46 }
 0xf8c   :  { %v2536_v63 = vadd.f32 -1.0, %v918_v60 }
 0xf8e   :  { %926 = vrot.lane.b32.xlu1 %v2536_v63, %s3192_s5 }
0x1000   :  { %v927_v0 = vpop.permute.xlu1 %926 }
0x1001   :  { %v929_v3 = vmul.f32 %v3104_v59, %v927_v0 }
0x1003   :  { %931 = vrot.lane.b32.xlu1 %v929_v3, %s3193_s25 }
0x1007   :  { %101 = vperm.xlu1 %3055, %v99_v26  }
0x1075   :  { %v932_v4 = vpop.permute.xlu1 %931 }
0x1076   :  { %v934_v7 = vadd.f32 %v932_v4, %v924_v53 }
0x1078   :  { %v2537_v8 = vmul.f32 -2.0, %v934_v7  ;;  %955 = vrot.lane.b32.xlu1 %v934_v7, %s3195_s28 }
0x107a   :  { %v937_v12 = vmul.f32 1.442695, %v2537_v8 }
0x107c   :  { %3105 = vpow2.f32 %v937_v12 }
0x1086   :  { %v3106_v13 = vpop.eup %3105  ;;  %v102_v16 = vpop.permute.xlu1 %101 }
0x1087   :  { %v939_v29 = vadd.f32 1.0, %v3106_v13  ;;  %vm103_vm10 = vcmp.eq.s32.totalorder %v102_v16, 1 }
0x1088   :  { %vm3590_vm11 = vmor %vm49_vm4, %vm103_vm10 }
0x1089   :  { %3107 = vrcp.f32 %v939_v29 }
0x1093   :  { %v3108_v39 = vpop.eup %3107 }
0x1094   :  { %v942_v48 = vmul.f32 2.0, %v3108_v39 }
0x1096   :  { %v2538_v14 = vadd.f32 -1.0, %v942_v48 }
0x1098   :  { %945 = vrot.lane.b32.xlu0 %v2538_v14, %s3192_s5 }
0x10ea   :  { %v956_v47 = vpop.permute.xlu1 %955 }
0x10eb   :  { %v958_v20 = vsel %vm3590_vm11, %v956_v47, %v837_v33 }
0x10ec   :  { %1042 = vrot.lane.b32.xlu1 %v958_v20, %s3193_s25 }
0x110a   :  { %v946_v22 = vpop.permute.xlu0 %945 }
0x110b   :  { %v948_v23 = vmul.f32 %v3104_v59, %v946_v22 }
0x110d   :  { %950 = vrot.lane.b32.xlu0 %v948_v23, %s3193_s25 }
0x115e   :  { %v1043_v37 = vpop.permute.xlu1 %1042 }
0x117f   :  { %v3598_v27 = vpop.permute.xlu0 %950 }
0x1180   :  { %v953_v28 = vsel %vm3590_vm11, %v3598_v27, %v832_v44  ;;  %v3613_v44 = vld [vmem:[%s4040_s1 + $0x8] sm:$0xff] }
0x1181   :  { %2791 = vmatmul.mubr.msk.f32.vlgmr.msra.gmra.mrb[12].mxu0 %vm147_vm1, %v953_v28  ;;  %vm105_vm13 = vcmp.gt.f32.partialorder %v3613_v44, 0.0 }
0x1182   :  { %v106_v32 = vsel %vm105_vm13, 1, %v3194_v62 }
0x1254   :  { %v1028_v52 = vpop.f32.mrb[12].mxu0 }
0x1255   :  { %v1032_v31 = vadd.f32 %v1028_v52, %v231_v45  ;;  %v2792_v33 = vpop.f32.mrb[13].mxu0 }
0x1257   :  { %v2540_v34 = vmul.f32 -1.442695, %v1032_v31 }
0x1259   :  { %3109 = vpow2.f32 %v2540_v34 }
0x1263   :  { %v3110_v35 = vpop.eup %3109 }
0x1264   :  { %v1036_v49 = vadd.f32 1.0, %v3110_v35 }
0x1266   :  { %3111 = vrcp.f32 %v1036_v49 }
0x1270   :  { %v3112_v51 = vpop.eup %3111 }
0x1271   :  { %v1039_v54 = vmul.f32 2.0, %v3112_v51  ;;  %v1045_v45 = vmul.f32 %v3112_v51, %v1043_v37 }
0x1273   :  { %v2541_v57 = vadd.f32 -1.0, %v1039_v54 }
0x1275   :  { %1047 = vrot.lane.b32.xlu0 %v2541_v57, %s3192_s5 }
0x12e7   :  { %v1048_v11 = vpop.permute.xlu0 %1047 }
0x12e8   :  { %v1050_v58 = vmul.f32 %v3112_v51, %v1048_v11 }
0x12ea   :  { %1052 = vrot.lane.b32.xlu0 %v1050_v58, %s3193_s25 }
0x12ee   :  { %108 = vperm.xlu0 %3056, %v106_v32  }
0x135c   :  { %v1053_v59 = vpop.permute.xlu0 %1052 }
0x135d   :  { %v1055_v60 = vadd.f32 %v1053_v59, %v1045_v45  ;;  %v1365_v59 = vld [vmem:[%s4042_s7 + $0x10] sm:$0xff] }
0x135f   :  { %v2542_v63 = vmul.f32 -2.0, %v1055_v60  ;;  %1076 = vrot.lane.b32.xlu0 %v1055_v60, %s3195_s28  ;;  %v1366_v60 = vld [vmem:[%s4042_s7 + $0x18] sm:$0xff] }
0x1361   :  { %v1058_v0 = vmul.f32 1.442695, %v2542_v63  ;;  %v3680_v63 = vpack.c.bf16 %v1366_v60, %v1365_v59 }
0x1363   :  { %3113 = vpow2.f32 %v1058_v0 }
0x136d   :  { %v3114_v3 = vpop.eup %3113  ;;  %v109_v7 = vpop.permute.xlu0 %108 }
0x136e   :  { %v1060_v26 = vadd.f32 1.0, %v3114_v3  ;;  %vm110_vm14 = vcmp.eq.s32.totalorder %v109_v7, 1 }
0x136f   :  { %vm3622_vm3 = vmor %vm49_vm4, %vm110_vm14 }
0x1370   :  { %3115 = vrcp.f32 %v1060_v26 }
0x137a   :  { %v3116_v46 = vpop.eup %3115 }
0x137b   :  { %v1063_v53 = vmul.f32 2.0, %v3116_v46 }
0x137d   :  { %v2543_v4 = vadd.f32 -1.0, %v1063_v53 }
0x137f   :  { %1066 = vrot.lane.b32.xlu1 %v2543_v4, %s3192_s5  ;;  %v1198_v4 = vsel %vm49_vm4, %v3523_v55, %v3560_v38 }
0x13d1   :  { %v1077_v8 = vpop.permute.xlu0 %1076 }
0x13d2   :  { %v1079_v12 = vsel %vm3622_vm3, %v1077_v8, %v958_v20 }
0x13d3   :  { %1163 = vrot.lane.b32.xlu0 %v1079_v12, %s3193_s25 }
0x13f1   :  { %v1067_v13 = vpop.permute.xlu1 %1066 }
0x13f2   :  { %v1069_v29 = vmul.f32 %v3112_v51, %v1067_v13  ;;  %v1199_v13 = vsel %vm49_vm4, %v3560_v38, %v3523_v55  ;;  %v1200_v55 = vsel %vm49_vm4, %v3598_v27, %v3485_v61 }
0x13f4   :  { %1071 = vrot.lane.b32.xlu1 %v1069_v29, %s3193_s25 }
0x1445   :  { %v1164_v42 = vpop.permute.xlu0 %1163 }
0x1466   :  { %v3630_v39 = vpop.permute.xlu1 %1071 }
0x1467   :  { %v1074_v48 = vsel %vm3622_vm3, %v3630_v39, %v953_v28  ;;  %v1196_v8 = vsel %vm49_vm4, %v3444_v6, %v3630_v39 }
0x1468   :  { %2802 = vmatmul.mubr.msk.f32.vlgmr.msra.gmra.mrb[8].mxu1 %vm147_vm1, %v1074_v48  ;;  %v1197_v48 = vsel %vm49_vm4, %v3485_v61, %v3598_v27  ;;  %v1201_v27 = vsel %vm49_vm4, %v3630_v39, %v3444_v6  ;;  %v2549_v6 = vld [vmem:[%s4043_s8] ss:$0 sm:$0xff] }
0x1469   :  { %2824 = vmatprep.mubr.msk.f32.mxu1 %vm3190_vm0, %v3191_v2 }
0x153b   :  { %v1149_v14 = vpop.f32.mrb[8].mxu1 }
0x153c   :  { %v1153_v16 = vadd.f32 %v1149_v14, %v232_v50  ;;  %v2803_v47 = vpop.f32.mrb[9].mxu1 }
0x153e   :  { %v2545_v20 = vmul.f32 -1.442695, %v1153_v16 }
0x1540   :  { %3117 = vpow2.f32 %v2545_v20 }
0x154a   :  { %v3118_v22 = vpop.eup %3117 }
0x154b   :  { %v1157_v23 = vadd.f32 1.0, %v3118_v22 }
0x154d   :  { %3119 = vrcp.f32 %v1157_v23 }
0x1557   :  { %v3120_v52 = vpop.eup %3119 }
0x1558   :  { %v1160_v28 = vmul.f32 2.0, %v3120_v52  ;;  %v1166_v50 = vmul.f32 %v3120_v52, %v1164_v42 }
0x155a   :  { %v2546_v31 = vadd.f32 -1.0, %v1160_v28 }
0x155c   :  { %1168 = vrot.lane.b32.xlu1 %v2546_v31, %s3192_s5 }
0x15ce   :  { %v1169_v33 = vpop.permute.xlu1 %1168 }
0x15cf   :  { %v1171_v34 = vmul.f32 %v3120_v52, %v1169_v33 }
0x15d1   :  { %1173 = vrot.lane.b32.xlu1 %v1171_v34, %s3193_s25 }
0x15d5   :  { %1205 = vperm.xlu1 %3055, %v39_v41  }
0x15d9   :  { %1215 = vperm.xlu1 %3055, %v3581_v17   ;;  %v3060_v17 = vld [vmem:[%s4041_s6 + $0x8] sm:$0xff]  }
0x15dd   :  { %1230 = vperm.xlu1 %3055, %v3468_v24   ;;  %v3059_v24 = vld [vmem:[%s4041_s6] sm:$0xff]  }
0x15de   :  { %2804 = vmatprep.subr.bf16.mxu0 %v3059_v24 }
0x15df   :  { %2805 = vmatpush3.bf16.msra.mxu0 %v3059_v24 }
0x15e0   :  { %2806 = vmatprep.subr.bf16.mxu0 %v3060_v17 }
0x15e3   :  { %2807 = vmatpush3.bf16.msra.mxu0 %v3060_v17 }
0x15e4   :  { %2994 = vmatprep.subr.bf16.mxu0 %v3189_v1 }
0x1643   :  { %v1174_v35 = vpop.permute.xlu1 %1173 }
0x1644   :  { %v1176_v49 = vadd.f32 %v1174_v35, %v1166_v50 }
0x1646   :  { %v2547_v51 = vmul.f32 -2.0, %v1176_v49 }
0x1648   :  { %v1179_v54 = vmul.f32 1.442695, %v2547_v51 }
0x164a   :  { %3121 = vpow2.f32 %v1179_v54 }
0x1654   :  { %v3122_v57 = vpop.eup %3121 }
0x1655   :  { %v1181_v11 = vadd.f32 1.0, %v3122_v57 }
0x1657   :  { %3123 = vrcp.f32 %v1181_v11 }
0x1661   :  { %v3124_v58 = vpop.eup %3123 }
0x1662   :  { %v1184_v32 = vmul.f32 2.0, %v3124_v58 }
0x1664   :  { %v2548_v37 = vadd.f32 -1.0, %v1184_v32 }
0x1666   :  { %1187 = vrot.lane.b32.xlu0 %v2548_v37, %s3192_s5 }
0x166a   :  { %1210 = vperm.xlu0 %3056, %v3613_v44  }
0x166e   :  { %1220 = vperm.xlu0 %3056, %v3543_v10  }
0x1672   :  { %1225 = vperm.xlu0 %3056, %v3506_v15   ;;  %v1364_v15 = vld [vmem:[%s4042_s7 + $0x8] sm:$0xff] }
0x1676   :  { %1235 = vperm.xlu0 %3056, %v3431_v43   ;;  %v1363_v43 = vld [vmem:[%s4042_s7] sm:$0xff] }
0x1677   :  { %v3669_v45 = vpack.c.bf16 %v1364_v15, %v1363_v43 }
0x1679   :  { %2984 = vmatpush3.bf16.msra.mxu1 %v3669_v45 }
0x167a   :  { %2985 = vmatprep.subr.bf16.mxu1 %v3189_v1 }
0x167d   :  { %2987 = vmatpush3.bf16.msra.mxu1 %v3680_v63 }
0x167e   :  { %2988 = vmatprep.subr.bf16.mxu1 %v3189_v1 }
0x1680   :  { %2825 = vmatmul.mubr.f32.vlgmr.msra.gmra.mrb[10].mxu1 %v3191_v2 }
0x1681   :  { %2990 = vmatpush3.bf16.msra.mxu1 %v3669_v45  ;;  %2835 = vmatprep.mubr.msk.f32.mxu1 %vm3190_vm0, %v3191_v2 }
0x1682   :  { %2991 = vmatprep.subr.bf16.mxu1 %v3189_v1 }
0x1685   :  { %2993 = vmatpush3.bf16.msra.mxu1 %v3680_v63 }
0x1686   :  { %3000 = vmatprep.subr.bf16.mxu1 %v3189_v1 }
0x16d8   :  { %v1188_v44 = vpop.permute.xlu0 %1187 }
0x16d9   :  { %v1190_v10 = vmul.f32 %v3120_v52, %v1188_v44 }
0x16db   :  { %1192 = vrot.lane.b32.xlu1 %v1190_v10, %s3193_s25 }
0x16df   :  { %1240 = vperm.xlu1 %3055, %v3392_v9   ;;  %v3691_v9 = vpop.permute.xlu1 %1205 }
0x16e3   :  { %v3695_v3 = vpop.permute.xlu1 %1215 }
0x16e4   :  { %v1245_v20 = vmul.f32 %v3695_v3, %v1197_v48 }
0x16e7   :  { %v3699_v46 = vpop.permute.xlu1 %1230 }
0x16e8   :  { %v1248_v38 = vmul.f32 %v3699_v46, %v1200_v55 }
0x16e9   :  { %v3693_v0 = vpop.permute.xlu0 %1210 }
0x16ea   :  { %v1244_v14 = vmul.f32 %v3693_v0, %v1196_v8 }
0x16ed   :  { %v3697_v26 = vpop.permute.xlu0 %1220 }
0x16ee   :  { %v1246_v12 = vmul.f32 %v3697_v26, %v1198_v4 }
0x16f0   :  { %v1252_v23 = vpack.c.bf16 %v1246_v12, %v1245_v20 }
0x16f1   :  { %v3701_v53 = vpop.permute.xlu0 %1225 }
0x16f2   :  { %v1247_v16 = vmul.f32 %v3701_v53, %v1199_v13 }
0x16f4   :  { %v1253_v52 = vpack.c.bf16 %v1248_v38, %v1247_v16 }
0x16f5   :  { %v3739_v61 = vpop.permute.xlu0 %1235 }
0x16f6   :  { %v1249_v33 = vmul.f32 %v3739_v61, %v1201_v27 }
0x174d   :  { %v1193_v7 = vpop.permute.xlu1 %1192 }
0x174e   :  { %v1195_v29 = vsel %vm49_vm4, %v3409_v21, %v1193_v7  ;;  %v1202_v28 = vsel %vm49_vm4, %v1193_v7, %v3409_v21 }
0x174f   :  { %v1243_v47 = vmul.f32 %v3691_v9, %v1195_v29 }
0x1751   :  { %v1251_v22 = vpack.c.bf16 %v1244_v14, %v1243_v47 }
0x1753   :  { %2808 = vmatprep.mubr.msk.bf16.mxu0 %vm147_vm1, %v1251_v22  ;;  %v1433_v42 = vpop.f32.mrb[10].mxu1 }
0x1754   :  { %2809 = vmatmul.mubr.msk.bf16.vlgmr.msra.gmra.mrb[16].mxu0 %vm147_vm1, %v1252_v23  ;;  %v2826_v50 = vpop.f32.mrb[11].mxu1 }
0x1755   :  { %2812 = vmatprep.mubr.msk.bf16.mxu0 %vm147_vm1, %v1253_v52  ;;  %2996 = vmatpush3.bf16.msra.mxu0 %v3669_v45 }
0x1756   :  { %2997 = vmatprep.subr.bf16.mxu0 %v3189_v1 }
0x1759   :  { %2999 = vmatpush3.bf16.msra.mxu0 %v3680_v63 }
0x175a   :  { %3006 = vmatprep.subr.bf16.mxu0 %v3189_v1 }
0x175e   :  { %v3748_v31 = vpop.permute.xlu1 %1240 }
0x175f   :  { %v1250_v34 = vmul.f32 %v3748_v31, %v1202_v28 }
0x1761   :  { %v1254_v41 = vpack.c.bf16 %v1250_v34, %v1249_v33 }
0x1763   :  { %2813 = vmatmul.mubr.msk.bf16.gmra.mrb[20].mxu0 %vm147_vm1, %v1254_v41 }
0x1764   :  { %2846 = vmatprep.mubr.msk.f32.mxu0 %vm3190_vm0, %v3191_v2 }
0x1827   :  { %v2810_v39 = vpop.f32.mrb[16].mxu0 }
0x1828   :  { %v3758_v21 = vadd.f32 %v2810_v39, %v2549_v6  ;;  %v1324_v35 = vpop.f32.mrb[17].mxu0 }
0x1829   :  { %v2811_v49 = vpop.f32.mrb[18].mxu0  ;;  %v3768_v17 = vadd.f32 %v2549_v6, %v1324_v35 }
0x182a   :  { %v3760_v51 = vadd.f32 %v2811_v49, %v2549_v6  ;;  %v1327_v54 = vpop.f32.mrb[19].mxu0 }
0x182b   :  { %v3762_v57 = vadd.f32 %v2549_v6, %v1327_v54 }
0x1836   :  { %v2814_v11 = vpop.f32.mrb[20].mxu0 }
0x1837   :  { %v3764_v58 = vadd.f32 %v2814_v11, %v2549_v6  ;;  %v1340_v32 = vpop.f32.mrb[21].mxu0 }
0x1838   :  { %v3766_v37 = vadd.f32 %v2549_v6, %v1340_v32  ;;  %v2815_v24 = vpop.f32.mrb[22].mxu0 }
0x1839   :  { %v3770_v44 = vadd.f32 %v2815_v24, %v2549_v6  ;;  %v1343_v10 = vpop.f32.mrb[23].mxu0  ;;  %v1356_v43 = vsel %vm3339_vm2, %v3762_v57, %v3764_v58  ;;  %v1361_v15 = vsel %vm3339_vm2, %v3764_v58, %v3762_v57 }
0x183a   :  { %v3780_v59 = vadd.f32 %v2549_v6, %v1343_v10  ;;  %v1358_v60 = vsel %vm3339_vm2, %v3760_v51, %v3766_v37  ;;  %v1359_v4 = vsel %vm3339_vm2, %v3766_v37, %v3760_v51 }
0x183b   :  { %v1355_v7 = vsel %vm3339_vm2, %v3768_v17, %v3770_v44  ;;  %v1362_v8 = vsel %vm3339_vm2, %v3770_v44, %v3768_v17 }
0x183c   :  { %v1437_v12 = vadd.f32 %v1433_v42, %v1355_v7  ;;  %v1357_v13 = vsel %vm3339_vm2, %v3758_v21, %v3780_v59  ;;  %v1360_v29 = vsel %vm3339_vm2, %v3780_v59, %v3758_v21  ;;  %vm2497_vm2 = vcmask 15360  }
0x183e   :  { %v2556_v48 = vmul.f32 -1.442695, %v1437_v12 }
0x1840   :  { %3125 = vpow2.f32 %v2556_v48 }
0x184a   :  { %v3126_v14 = vpop.eup %3125 }
0x184b   :  { %v1441_v16 = vadd.f32 1.0, %v3126_v14 }
0x184d   :  { %3127 = vrcp.f32 %v1441_v16 }
0x1857   :  { %v3128_v47 = vpop.eup %3127 }
0x1858   :  { %v1444_v20 = vmul.f32 2.0, %v3128_v47  ;;  %v1446_v23 = vmul.f32 0.0, %v3128_v47 }
0x185a   :  { %v2557_v55 = vadd.f32 -1.0, %v1444_v20 }
0x185c   :  { %1448 = vrot.lane.b32.xlu0 %v2557_v55, %s3192_s5 }
0x18ce   :  { %v1449_v38 = vpop.permute.xlu0 %1448 }
0x18cf   :  { %v1451_v22 = vmul.f32 %v3128_v47, %v1449_v38 }
0x18d1   :  { %1453 = vrot.lane.b32.xlu1 %v1451_v22, %s3193_s25 }
0x1943   :  { %v1454_v52 = vpop.permute.xlu1 %1453 }
0x1944   :  { %v1456_v27 = vadd.f32 %v1454_v52, %v1446_v23 }
0x1946   :  { %v2558_v28 = vmul.f32 -2.0, %v1456_v27 }
0x1948   :  { %v1459_v33 = vmul.f32 1.442695, %v2558_v28 }
0x194a   :  { %3129 = vpow2.f32 %v1459_v33 }
0x1954   :  { %v3130_v34 = vpop.eup %3129 }
0x1955   :  { %v1461_v41 = vadd.f32 1.0, %v3130_v34 }
0x1957   :  { %3131 = vrcp.f32 %v1461_v41 }
0x1961   :  { %v3132_v42 = vpop.eup %3131 }
0x1962   :  { %v1464_v50 = vmul.f32 2.0, %v3132_v42 }
0x1964   :  { %v2559_v6 = vadd.f32 -1.0, %v1464_v50 }
0x1966   :  { %1467 = vrot.lane.b32.xlu0 %v2559_v6, %s3192_s5 }
0x196a   :  { %1477 = vrot.lane.b32.xlu0 %v1456_v27, %s3195_s28 }
0x19d8   :  { %v1468_v39 = vpop.permute.xlu0 %1467 }
0x19d9   :  { %v1470_v35 = vmul.f32 %v3128_v47, %v1468_v39 }
0x19db   :  { %1472 = vrot.lane.b32.xlu1 %v1470_v35, %s3193_s25 }
0x19dc   :  { %v1478_v49 = vpop.permute.xlu0 %1477 }
0x19dd   :  { %v1480_v54 = vsel %vm3402_vm6, %v1478_v49, 0.0 }
0x19de   :  { %1564 = vrot.lane.b32.xlu0 %v1480_v54, %s3193_s25 }
0x1a4d   :  { %v3814_v11 = vpop.permute.xlu1 %1472 }
0x1a4e   :  { %v1475_v32 = vsel %vm3402_vm6, %v3814_v11, 0.0 }
0x1a4f   :  { %2836 = vmatmul.mubr.msk.f32.vlgmr.msra.gmra.mrb[12].mxu1 %vm147_vm1, %v1475_v32 }
0x1a50   :  { %3002 = vmatpush3.bf16.msra.mxu1 %v3669_v45  ;;  %2857 = vmatprep.mubr.msk.f32.mxu1 %vm3190_vm0, %v3191_v2  ;;  %v1565_v38 = vpop.permute.xlu0 %1564 }
0x1a51   :  { %3003 = vmatprep.subr.bf16.mxu1 %v3189_v1 }
0x1a54   :  { %3005 = vmatpush3.bf16.msra.mxu1 %v3680_v63 }
0x1a55   :  { %3012 = vmatprep.subr.bf16.mxu1 %v3189_v1 }
0x1b22   :  { %v1550_v24 = vpop.f32.mrb[12].mxu1 }
0x1b23   :  { %v1554_v10 = vadd.f32 %v1550_v24, %v1356_v43  ;;  %v2837_v7 = vpop.f32.mrb[13].mxu1 }
0x1b25   :  { %v2561_v12 = vmul.f32 -1.442695, %v1554_v10 }
0x1b27   :  { %3133 = vpow2.f32 %v2561_v12 }
0x1b31   :  { %v3134_v18 = vpop.eup %3133 }
0x1b32   :  { %v1558_v48 = vadd.f32 1.0, %v3134_v18 }
0x1b34   :  { %3135 = vrcp.f32 %v1558_v48 }
0x1b3e   :  { %v3136_v14 = vpop.eup %3135 }
0x1b3f   :  { %v1561_v16 = vmul.f32 2.0, %v3136_v14  ;;  %v1567_v22 = vmul.f32 %v3136_v14, %v1565_v38 }
0x1b41   :  { %v2562_v47 = vadd.f32 -1.0, %v1561_v16 }
0x1b43   :  { %1569 = vrot.lane.b32.xlu1 %v2562_v47, %s3192_s5 }
0x1bb5   :  { %v1570_v20 = vpop.permute.xlu1 %1569 }
0x1bb6   :  { %v1572_v55 = vmul.f32 %v3136_v14, %v1570_v20 }
0x1bb8   :  { %1574 = vrot.lane.b32.xlu1 %v1572_v55, %s3193_s25 }
0x1c2a   :  { %v1575_v23 = vpop.permute.xlu1 %1574 }
0x1c2b   :  { %v1577_v52 = vadd.f32 %v1575_v23, %v1567_v22 }
0x1c2d   :  { %v2563_v43 = vmul.f32 -2.0, %v1577_v52 }
0x1c2f   :  { %v1580_v27 = vmul.f32 1.442695, %v2563_v43 }
0x1c31   :  { %3137 = vpow2.f32 %v1580_v27 }
0x1c3b   :  { %v3138_v28 = vpop.eup %3137 }
0x1c3c   :  { %v1582_v33 = vadd.f32 1.0, %v3138_v28 }
0x1c3e   :  { %3139 = vrcp.f32 %v1582_v33 }
0x1c48   :  { %v3140_v34 = vpop.eup %3139 }
0x1c49   :  { %v1585_v41 = vmul.f32 2.0, %v3140_v34 }
0x1c4b   :  { %v2564_v42 = vadd.f32 -1.0, %v1585_v41 }
0x1c4d   :  { %1588 = vrot.lane.b32.xlu0 %v2564_v42, %s3192_s5 }
0x1c51   :  { %1598 = vrot.lane.b32.xlu0 %v1577_v52, %s3195_s28 }
0x1cbf   :  { %v1589_v50 = vpop.permute.xlu0 %1588 }
0x1cc0   :  { %v1591_v6 = vmul.f32 %v3136_v14, %v1589_v50 }
0x1cc2   :  { %1593 = vrot.lane.b32.xlu1 %v1591_v6, %s3193_s25 }
0x1cc3   :  { %v1599_v39 = vpop.permute.xlu0 %1598 }
0x1cc4   :  { %v1601_v35 = vsel %vm3440_vm9, %v1599_v39, %v1480_v54 }
0x1cc5   :  { %1685 = vrot.lane.b32.xlu0 %v1601_v35, %s3193_s25 }
0x1d34   :  { %v3834_v49 = vpop.permute.xlu1 %1593 }
0x1d35   :  { %v1596_v24 = vsel %vm3440_vm9, %v3834_v49, %v1475_v32 }
0x1d36   :  { %2847 = vmatmul.mubr.msk.f32.vlgmr.msra.gmra.mrb[14].mxu0 %vm147_vm1, %v1596_v24 }
0x1d37   :  { %3008 = vmatpush3.bf16.msra.mxu0 %v3669_v45  ;;  %2868 = vmatprep.mubr.msk.f32.mxu0 %vm3190_vm0, %v3191_v2  ;;  %v1686_v20 = vpop.permute.xlu0 %1685 }
0x1d38   :  { %3009 = vmatprep.subr.bf16.mxu0 %v3189_v1 }
0x1d3b   :  { %3011 = vmatpush3.bf16.msra.mxu0 %v3680_v63 }
0x1d3c   :  { %3018 = vmatprep.subr.bf16.mxu0 %v3189_v1 }
0x1e09   :  { %v1671_v54 = vpop.f32.mrb[14].mxu0 }
0x1e0a   :  { %v1675_v5 = vadd.f32 %v1671_v54, %v1357_v13  ;;  %v2848_v32 = vpop.f32.mrb[15].mxu0 }
0x1e0c   :  { %v2566_v10 = vmul.f32 -1.442695, %v1675_v5 }
0x1e0e   :  { %3141 = vpow2.f32 %v2566_v10 }
0x1e18   :  { %v3142_v7 = vpop.eup %3141 }
0x1e19   :  { %v1679_v12 = vadd.f32 1.0, %v3142_v7 }
0x1e1b   :  { %3143 = vrcp.f32 %v1679_v12 }
0x1e25   :  { %v3144_v18 = vpop.eup %3143 }
0x1e26   :  { %v1682_v48 = vmul.f32 2.0, %v3144_v18  ;;  %v1688_v55 = vmul.f32 %v3144_v18, %v1686_v20 }
0x1e28   :  { %v2567_v14 = vadd.f32 -1.0, %v1682_v48 }
0x1e2a   :  { %1690 = vrot.lane.b32.xlu1 %v2567_v14, %s3192_s5 }
0x1e9c   :  { %v1691_v16 = vpop.permute.xlu1 %1690 }
0x1e9d   :  { %v1693_v47 = vmul.f32 %v3144_v18, %v1691_v16 }
0x1e9f   :  { %1695 = vrot.lane.b32.xlu1 %v1693_v47, %s3193_s25 }
0x1f11   :  { %v1696_v38 = vpop.permute.xlu1 %1695 }
0x1f12   :  { %v1698_v22 = vadd.f32 %v1696_v38, %v1688_v55 }
0x1f14   :  { %v2568_v13 = vmul.f32 -2.0, %v1698_v22 }
0x1f16   :  { %v1701_v23 = vmul.f32 1.442695, %v2568_v13 }
0x1f18   :  { %3145 = vpow2.f32 %v1701_v23 }
0x1f22   :  { %v3146_v52 = vpop.eup %3145 }
0x1f23   :  { %v1703_v43 = vadd.f32 1.0, %v3146_v52 }
0x1f25   :  { %3147 = vrcp.f32 %v1703_v43 }
0x1f2f   :  { %v3148_v27 = vpop.eup %3147 }
0x1f30   :  { %v1706_v28 = vmul.f32 2.0, %v3148_v27 }
0x1f32   :  { %v2569_v33 = vadd.f32 -1.0, %v1706_v28 }
0x1f34   :  { %1709 = vrot.lane.b32.xlu0 %v2569_v33, %s3192_s5 }
0x1f38   :  { %1719 = vrot.lane.b32.xlu0 %v1698_v22, %s3195_s28 }
0x1fa6   :  { %v1710_v34 = vpop.permute.xlu0 %1709 }
0x1fa7   :  { %v1712_v41 = vmul.f32 %v3144_v18, %v1710_v34 }
0x1fa9   :  { %1714 = vrot.lane.b32.xlu1 %v1712_v41, %s3193_s25 }
0x1faa   :  { %v1720_v42 = vpop.permute.xlu0 %1719 }
0x1fab   :  { %v1722_v50 = vsel %vm3477_vm12, %v1720_v42, %v1601_v35 }
0x1fac   :  { %1806 = vrot.lane.b32.xlu0 %v1722_v50, %s3193_s25 }
0x201b   :  { %v3859_v6 = vpop.permute.xlu1 %1714 }
0x201c   :  { %v1717_v39 = vsel %vm3477_vm12, %v3859_v6, %v1596_v24 }
0x201d   :  { %2858 = vmatmul.mubr.msk.f32.vlgmr.msra.gmra.mrb[14].mxu1 %vm147_vm1, %v1717_v39 }
0x201e   :  { %3014 = vmatpush3.bf16.msra.mxu1 %v3669_v45  ;;  %2879 = vmatprep.mubr.msk.f32.mxu1 %vm3190_vm0, %v3191_v2  ;;  %v1807_v14 = vpop.permute.xlu0 %1806 }
0x201f   :  { %3015 = vmatprep.subr.bf16.mxu1 %v3189_v1 }
0x2022   :  { %3017 = vmatpush3.bf16.msra.mxu1 %v3680_v63 }
0x2023   :  { %3024 = vmatprep.subr.bf16.mxu1 %v3189_v1 }
0x20f0   :  { %v1792_v35 = vpop.f32.mrb[14].mxu1 }
0x20f1   :  { %v1796_v56 = vadd.f32 %v1792_v35, %v1358_v60  ;;  %v2859_v24 = vpop.f32.mrb[15].mxu1 }
0x20f3   :  { %v2571_v54 = vmul.f32 -1.442695, %v1796_v56 }
0x20f5   :  { %3149 = vpow2.f32 %v2571_v54 }
0x20ff   :  { %v3150_v5 = vpop.eup %3149 }
0x2100   :  { %v1800_v32 = vadd.f32 1.0, %v3150_v5 }
0x2102   :  { %3151 = vrcp.f32 %v1800_v32 }
0x210c   :  { %v3152_v10 = vpop.eup %3151 }
0x210d   :  { %v1803_v7 = vmul.f32 2.0, %v3152_v10  ;;  %v1809_v16 = vmul.f32 %v3152_v10, %v1807_v14 }
0x210f   :  { %v2572_v12 = vadd.f32 -1.0, %v1803_v7 }
0x2111   :  { %1811 = vrot.lane.b32.xlu1 %v2572_v12, %s3192_s5 }
0x2183   :  { %v1812_v18 = vpop.permute.xlu1 %1811 }
0x2184   :  { %v1814_v48 = vmul.f32 %v3152_v10, %v1812_v18 }
0x2186   :  { %1816 = vrot.lane.b32.xlu1 %v1814_v48, %s3193_s25 }
0x21f8   :  { %v1817_v47 = vpop.permute.xlu1 %1816 }
0x21f9   :  { %v1819_v20 = vadd.f32 %v1817_v47, %v1809_v16 }
0x21fb   :  { %v2573_v60 = vmul.f32 -2.0, %v1819_v20 }
0x21fd   :  { %v1822_v55 = vmul.f32 1.442695, %v2573_v60 }
0x21ff   :  { %3153 = vpow2.f32 %v1822_v55 }
0x2209   :  { %v3154_v38 = vpop.eup %3153 }
0x220a   :  { %v1824_v22 = vadd.f32 1.0, %v3154_v38 }
0x220c   :  { %3155 = vrcp.f32 %v1824_v22 }
0x2216   :  { %v3156_v13 = vpop.eup %3155 }
0x2217   :  { %v1827_v23 = vmul.f32 2.0, %v3156_v13 }
0x2219   :  { %v2574_v52 = vadd.f32 -1.0, %v1827_v23 }
0x221b   :  { %1830 = vrot.lane.b32.xlu0 %v2574_v52, %s3192_s5 }
0x221f   :  { %1840 = vrot.lane.b32.xlu0 %v1819_v20, %s3195_s28 }
0x228d   :  { %v1831_v43 = vpop.permute.xlu0 %1830 }
0x228e   :  { %v1833_v27 = vmul.f32 %v3152_v10, %v1831_v43 }
0x2290   :  { %1835 = vrot.lane.b32.xlu1 %v1833_v27, %s3193_s25 }
0x2291   :  { %v1841_v28 = vpop.permute.xlu0 %1840 }
0x2292   :  { %v1843_v33 = vsel %vm3515_vm15, %v1841_v28, %v1722_v50 }
0x2293   :  { %1927 = vrot.lane.b32.xlu0 %v1843_v33, %s3193_s25 }
0x2302   :  { %v3884_v34 = vpop.permute.xlu1 %1835 }
0x2303   :  { %v1838_v41 = vsel %vm3515_vm15, %v3884_v34, %v1717_v39 }
0x2304   :  { %2869 = vmatmul.mubr.msk.f32.vlgmr.msra.gmra.mrb[24].mxu0 %vm147_vm1, %v1838_v41 }
0x2305   :  { %3020 = vmatpush3.bf16.msra.mxu0 %v3669_v45  ;;  %2890 = vmatprep.mubr.msk.f32.mxu0 %vm3190_vm0, %v3191_v2  ;;  %v1928_v7 = vpop.permute.xlu0 %1927 }
0x2306   :  { %3021 = vmatprep.subr.bf16.mxu0 %v3189_v1 }
0x2309   :  { %3023 = vmatpush3.bf16.msra.mxu0 %v3680_v63 }
0x230a   :  { %3030 = vmatprep.subr.bf16.mxu0 %v3189_v1 }
0x23d7   :  { %v1913_v42 = vpop.f32.mrb[24].mxu0 }
0x23d8   :  { %v1917_v40 = vadd.f32 %v1913_v42, %v1359_v4  ;;  %v2870_v50 = vpop.f32.mrb[25].mxu0 }
0x23da   :  { %v2576_v39 = vmul.f32 -1.442695, %v1917_v40 }
0x23dc   :  { %3157 = vpow2.f32 %v2576_v39 }
0x23e6   :  { %v3158_v35 = vpop.eup %3157 }
0x23e7   :  { %v1921_v56 = vadd.f32 1.0, %v3158_v35 }
0x23e9   :  { %3159 = vrcp.f32 %v1921_v56 }
0x23f3   :  { %v3160_v24 = vpop.eup %3159 }
0x23f4   :  { %v1924_v54 = vmul.f32 2.0, %v3160_v24  ;;  %v1930_v12 = vmul.f32 %v3160_v24, %v1928_v7 }
0x23f6   :  { %v2577_v5 = vadd.f32 -1.0, %v1924_v54 }
0x23f8   :  { %1932 = vrot.lane.b32.xlu1 %v2577_v5, %s3192_s5 }
0x246a   :  { %v1933_v32 = vpop.permute.xlu1 %1932 }
0x246b   :  { %v1935_v10 = vmul.f32 %v3160_v24, %v1933_v32 }
0x246d   :  { %1937 = vrot.lane.b32.xlu1 %v1935_v10, %s3193_s25 }
0x24df   :  { %v1938_v18 = vpop.permute.xlu1 %1937 }
0x24e0   :  { %v1940_v51 = vadd.f32 %v1938_v18, %v1930_v12 }
0x24e2   :  { %v2578_v37 = vmul.f32 -2.0, %v1940_v51 }
0x24e4   :  { %v1943_v4 = vmul.f32 1.442695, %v2578_v37 }
0x24e6   :  { %3161 = vpow2.f32 %v1943_v4 }
0x24f0   :  { %v3162_v48 = vpop.eup %3161 }
0x24f1   :  { %v1945_v14 = vadd.f32 1.0, %v3162_v48 }
0x24f3   :  { %3163 = vrcp.f32 %v1945_v14 }
0x24fd   :  { %v3164_v16 = vpop.eup %3163 }
0x24fe   :  { %v1948_v47 = vmul.f32 2.0, %v3164_v16 }
0x2500   :  { %v2579_v20 = vadd.f32 -1.0, %v1948_v47 }
0x2502   :  { %1951 = vrot.lane.b32.xlu0 %v2579_v20, %s3192_s5 }
0x2506   :  { %1961 = vrot.lane.b32.xlu0 %v1940_v51, %s3195_s28 }
0x2574   :  { %v1952_v60 = vpop.permute.xlu0 %1951 }
0x2575   :  { %v1954_v55 = vmul.f32 %v3160_v24, %v1952_v60 }
0x2577   :  { %1956 = vrot.lane.b32.xlu1 %v1954_v55, %s3193_s25 }
0x2578   :  { %v1962_v38 = vpop.permute.xlu0 %1961 }
0x2579   :  { %v1964_v22 = vsel %vm3552_vm7, %v1962_v38, %v1843_v33 }
0x257a   :  { %2048 = vrot.lane.b32.xlu0 %v1964_v22, %s3193_s25 }
0x25e9   :  { %v3909_v13 = vpop.permute.xlu1 %1956 }
0x25ea   :  { %v1959_v23 = vsel %vm3552_vm7, %v3909_v13, %v1838_v41 }
0x25eb   :  { %2880 = vmatmul.mubr.msk.f32.vlgmr.msra.gmra.mrb[16].mxu1 %vm147_vm1, %v1959_v23 }
0x25ec   :  { %3026 = vmatpush3.bf16.msra.mxu1 %v3669_v45  ;;  %2901 = vmatprep.mubr.msk.f32.mxu1 %vm3190_vm0, %v3191_v2  ;;  %v2049_v50 = vpop.permute.xlu0 %2048 }
0x25ed   :  { %3027 = vmatprep.subr.bf16.mxu1 %v3189_v1 }
0x25f0   :  { %3029 = vmatpush3.bf16.msra.mxu1 %v3680_v63 }
0x25f1   :  { %3042 = vmatprep.subr.bf16.mxu1 %v3189_v1 }
0x26be   :  { %v2034_v52 = vpop.f32.mrb[16].mxu1 }
0x26bf   :  { %v2038_v30 = vadd.f32 %v2034_v52, %v1360_v29  ;;  %v2881_v43 = vpop.f32.mrb[17].mxu1 }
0x26c1   :  { %v2581_v27 = vmul.f32 -1.442695, %v2038_v30 }
0x26c3   :  { %3165 = vpow2.f32 %v2581_v27 }
0x26cd   :  { %v3166_v45 = vpop.eup %3165 }
0x26ce   :  { %v2042_v28 = vadd.f32 1.0, %v3166_v45 }
0x26d0   :  { %3167 = vrcp.f32 %v2042_v28 }
0x26da   :  { %v3168_v33 = vpop.eup %3167 }
0x26db   :  { %v2045_v41 = vmul.f32 2.0, %v3168_v33  ;;  %v2051_v39 = vmul.f32 %v3168_v33, %v2049_v50 }
0x26dd   :  { %v2582_v42 = vadd.f32 -1.0, %v2045_v41 }
0x26df   :  { %2053 = vrot.lane.b32.xlu1 %v2582_v42, %s3192_s5 }
0x2751   :  { %v2054_v63 = vpop.permute.xlu1 %2053 }
0x2752   :  { %v2056_v40 = vmul.f32 %v3168_v33, %v2054_v63 }
0x2754   :  { %2058 = vrot.lane.b32.xlu1 %v2056_v40, %s3193_s25 }
0x27c6   :  { %v2059_v35 = vpop.permute.xlu1 %2058 }
0x27c7   :  { %v2061_v21 = vadd.f32 %v2059_v35, %v2051_v39 }
0x27c9   :  { %v2583_v59 = vmul.f32 -2.0, %v2061_v21 }
0x27cb   :  { %v2064_v29 = vmul.f32 1.442695, %v2583_v59 }
0x27cd   :  { %3169 = vpow2.f32 %v2064_v29 }
0x27d7   :  { %v3170_v56 = vpop.eup %3169 }
0x27d8   :  { %v2066_v24 = vadd.f32 1.0, %v3170_v56 }
0x27da   :  { %3171 = vrcp.f32 %v2066_v24 }
0x27e4   :  { %v3172_v54 = vpop.eup %3171 }
0x27e5   :  { %v2069_v5 = vmul.f32 2.0, %v3172_v54 }
0x27e7   :  { %v2584_v32 = vadd.f32 -1.0, %v2069_v5 }
0x27e9   :  { %2072 = vrot.lane.b32.xlu0 %v2584_v32, %s3192_s5 }
0x27ed   :  { %2082 = vrot.lane.b32.xlu0 %v2061_v21, %s3195_s28 }
0x285b   :  { %v2073_v10 = vpop.permute.xlu0 %2072 }
0x285c   :  { %v2075_v7 = vmul.f32 %v3168_v33, %v2073_v10 }
0x285e   :  { %2077 = vrot.lane.b32.xlu1 %v2075_v7, %s3193_s25 }
0x285f   :  { %v2083_v12 = vpop.permute.xlu0 %2082 }
0x2860   :  { %v2085_v18 = vsel %vm3590_vm11, %v2083_v12, %v1964_v22 }
0x2861   :  { %2169 = vrot.lane.b32.xlu0 %v2085_v18, %s3193_s25 }
0x28d0   :  { %v3934_v51 = vpop.permute.xlu1 %2077 }
0x28d1   :  { %v2080_v37 = vsel %vm3590_vm11, %v3934_v51, %v1959_v23 }
0x28d2   :  { %2891 = vmatmul.mubr.msk.f32.vlgmr.msra.gmra.mrb[26].mxu0 %vm147_vm1, %v2080_v37 }
0x28d3   :  { %2920 = vmatprep.mubr.msk.f32.mxu0 %vm3190_vm0, %v3191_v2  ;;  %v2170_v23 = vpop.permute.xlu0 %2169 }
0x29a5   :  { %v2155_v4 = vpop.f32.mrb[26].mxu0 }
0x29a6   :  { %v2159_v48 = vadd.f32 %v2155_v4, %v1361_v15  ;;  %v2892_v14 = vpop.f32.mrb[27].mxu0 }
0x29a8   :  { %v2586_v16 = vmul.f32 -1.442695, %v2159_v48 }
0x29aa   :  { %3173 = vpow2.f32 %v2586_v16 }
0x29b4   :  { %v3174_v47 = vpop.eup %3173 }
0x29b5   :  { %v2163_v20 = vadd.f32 1.0, %v3174_v47  ;;  %v2413_v47 = vld [vmem:[%s4044_s9] sm:$0xff] }
0x29b7   :  { %3175 = vrcp.f32 %v2163_v20  ;;  %v2414_v20 = vld [vmem:[%s4044_s9 + $0x8] sm:$0xff] }
0x29c1   :  { %v3176_v19 = vpop.eup %3175 }
0x29c2   :  { %v2166_v60 = vmul.f32 2.0, %v3176_v19  ;;  %v2172_v52 = vmul.f32 %v3176_v19, %v2170_v23 }
0x29c4   :  { %v2587_v55 = vadd.f32 -1.0, %v2166_v60  ;;  %v3043_v60 = vpack.c.bf16 %v2414_v20, %v2413_v47 }
0x29c6   :  { %2174 = vrot.lane.b32.xlu1 %v2587_v55, %s3192_s5  ;;  %v2416_v55 = vld [vmem:[%s4044_s9 + $0x18] sm:$0xff] }
0x2a38   :  { %v2175_v38 = vpop.permute.xlu1 %2174 }
0x2a39   :  { %v2177_v22 = vmul.f32 %v3176_v19, %v2175_v38 }
0x2a3b   :  { %2179 = vrot.lane.b32.xlu1 %v2177_v22, %s3193_s25 }
0x2aad   :  { %v2180_v30 = vpop.permute.xlu1 %2179 }
0x2aae   :  { %v2182_v57 = vadd.f32 %v2180_v30, %v2172_v52  ;;  %v2324_v52 = vsel %vm49_vm4, %v3859_v6, %v3934_v51 }
0x2ab0   :  { %v2588_v58 = vmul.f32 -2.0, %v2182_v57 }
0x2ab2   :  { %v2185_v15 = vmul.f32 1.442695, %v2588_v58 }
0x2ab4   :  { %3177 = vpow2.f32 %v2185_v15  ;;  %v2325_v15 = vsel %vm49_vm4, %v3884_v34, %v3909_v13 }
0x2abe   :  { %v3178_v43 = vpop.eup %3177 }
0x2abf   :  { %v2187_v27 = vadd.f32 1.0, %v3178_v43  ;;  %v2332_v43 = vmul.f32 %v2324_v52, %v3695_v3 }
0x2ac1   :  { %3179 = vrcp.f32 %v2187_v27 }
0x2acb   :  { %v3180_v45 = vpop.eup %3179 }
0x2acc   :  { %v2190_v28 = vmul.f32 2.0, %v3180_v45  ;;  %v2327_v45 = vsel %vm49_vm4, %v3934_v51, %v3859_v6 }
0x2ace   :  { %v2589_v33 = vadd.f32 -1.0, %v2190_v28  ;;  %v2333_v28 = vmul.f32 %v2325_v15, %v3697_v26 }
0x2ad0   :  { %2193 = vrot.lane.b32.xlu0 %v2589_v33, %s3192_s5  ;;  %v3034_v33 = vpack.c.bf16 %v2333_v28, %v2332_v43 }
0x2ad4   :  { %2203 = vrot.lane.b32.xlu0 %v2182_v57, %s3195_s28 }
0x2b42   :  { %v2194_v41 = vpop.permute.xlu0 %2193 }
0x2b43   :  { %v2196_v42 = vmul.f32 %v3176_v19, %v2194_v41  ;;  %v2415_v19 = vld [vmem:[%s4044_s9 + $0x10] sm:$0xff] }
0x2b44   :  { %v3046_v38 = vpack.c.bf16 %v2416_v55, %v2415_v19 }
0x2b45   :  { %2198 = vrot.lane.b32.xlu1 %v2196_v42, %s3193_s25 }
0x2b46   :  { %v2204_v63 = vpop.permute.xlu0 %2203 }
0x2b47   :  { %v2206_v40 = vsel %vm3622_vm3, %v2204_v63, %v2085_v18 }
0x2b48   :  { %2290 = vrot.lane.b32.xlu0 %v2206_v40, %s3193_s25 }
0x2bb7   :  { %v3955_v50 = vpop.permute.xlu1 %2198 }
0x2bb8   :  { %v2201_v39 = vsel %vm3622_vm3, %v3955_v50, %v2080_v37  ;;  %v2323_v22 = vsel %vm49_vm4, %v3834_v49, %v3955_v50  ;;  %v2328_v26 = vsel %vm49_vm4, %v3955_v50, %v3834_v49 }
0x2bb9   :  { %2902 = vmatmul.mubr.msk.f32.vlgmr.msra.gmra.mrb[18].mxu1 %vm147_vm1, %v2201_v39  ;;  %v2331_v57 = vmul.f32 %v2323_v22, %v3693_v0  ;;  %v2335_v0 = vmul.f32 %v2327_v45, %v3699_v46  ;;  %v2336_v46 = vmul.f32 %v2328_v26, %v3739_v61 }
0x2bba   :  { %2931 = vmatprep.mubr.msk.f32.mxu1 %vm3190_vm0, %v3191_v2  ;;  %v2291_v36 = vpop.permute.xlu0 %2290  ;;  %3044 = vmatpush3.bf16.msra.mxu1 %v3043_v60  ;;  %vm2339_vm0 = vcmask 523264  }
0x2bbb   :  { %3045 = vmatprep.subr.bf16.mxu1 %v3189_v1 }
0x2bbe   :  { %3047 = vmatpush3.bf16.msra.mxu1 %v3046_v38 }
0x2c8c   :  { %v2276_v35 = vpop.f32.mrb[18].mxu1 }
0x2c8d   :  { %v2280_v21 = vadd.f32 %v2276_v35, %v1362_v8  ;;  %v2903_v59 = vpop.f32.mrb[19].mxu1 }
0x2c8f   :  { %v2591_v29 = vmul.f32 -1.442695, %v2280_v21 }
0x2c91   :  { %3181 = vpow2.f32 %v2591_v29 }
0x2c9b   :  { %v3182_v56 = vpop.eup %3181 }
0x2c9c   :  { %v2284_v24 = vadd.f32 1.0, %v3182_v56 }
0x2c9e   :  { %3183 = vrcp.f32 %v2284_v24 }
0x2ca8   :  { %v3184_v62 = vpop.eup %3183 }
0x2ca9   :  { %v2287_v54 = vmul.f32 2.0, %v3184_v62  ;;  %v2293_v10 = vmul.f32 %v3184_v62, %v2291_v36 }
0x2cab   :  { %v2592_v5 = vadd.f32 -1.0, %v2287_v54 }
0x2cad   :  { %2295 = vrot.lane.b32.xlu1 %v2592_v5, %s3192_s5 }
0x2d1f   :  { %v2296_v32 = vpop.permute.xlu1 %2295 }
0x2d20   :  { %v2298_v2 = vmul.f32 %v3184_v62, %v2296_v32 }
0x2d22   :  { %2300 = vrot.lane.b32.xlu1 %v2298_v2, %s3193_s25 }
0x2d94   :  { %v2301_v7 = vpop.permute.xlu1 %2300 }
0x2d95   :  { %v2303_v17 = vadd.f32 %v2301_v7, %v2293_v10 }
0x2d97   :  { %v2593_v44 = vmul.f32 -2.0, %v2303_v17 }
0x2d99   :  { %v2306_v8 = vmul.f32 1.442695, %v2593_v44 }
0x2d9b   :  { %3185 = vpow2.f32 %v2306_v8 }
0x2da5   :  { %v3186_v12 = vpop.eup %3185 }
0x2da6   :  { %v2308_v18 = vadd.f32 1.0, %v3186_v12 }
0x2da8   :  { %3187 = vrcp.f32 %v2308_v18 }
0x2db2   :  { %v3188_v37 = vpop.eup %3187 }
0x2db3   :  { %v2311_v4 = vmul.f32 2.0, %v3188_v37 }
0x2db5   :  { %v2594_v48 = vadd.f32 -1.0, %v2311_v4 }
0x2db7   :  { %2314 = vrot.lane.b32.xlu0 %v2594_v48, %s3192_s5 }
0x2e29   :  { %v2315_v14 = vpop.permute.xlu0 %2314 }
0x2e2a   :  { %v2317_v16 = vmul.f32 %v3184_v62, %v2315_v14 }
0x2e2c   :  { %2319 = vrot.lane.b32.xlu1 %v2317_v16, %s3193_s25 }
0x2e9e   :  { %v2320_v23 = vpop.permute.xlu1 %2319 }
0x2e9f   :  { %v2322_v30 = vsel %vm49_vm4, %v3814_v11, %v2320_v23  ;;  %v2329_v3 = vsel %vm49_vm4, %v2320_v23, %v3814_v11 }
0x2ea0   :  { %v2330_v58 = vmul.f32 %v2322_v30, %v3691_v9  ;;  %v2326_v9 = vsel %vm49_vm4, %v3909_v13, %v3884_v34  ;;  %v2337_v34 = vmul.f32 %v2329_v3, %v3748_v31  ;;  %v2596_v31 = vld [vmem:[%s4046_s10] ss:$0 sm:$0xff] }
0x2ea1   :  { %v2334_v41 = vmul.f32 %v2326_v9, %v3701_v53  ;;  %v2338_v53 = vld [vmem:[%s4045_s2] sm:$0xff] }
0x2ea2   :  { %v3031_v27 = vpack.c.bf16 %v2331_v57, %v2330_v58  ;;  %v3040_v13 = vpack.c.bf16 %v2337_v34, %v2336_v46 }
0x2ea3   :  { %v3037_v6 = vpack.c.bf16 %v2335_v0, %v2334_v41 }
0x2ea4   :  { %3032 = vmatpush3.bf16.msra.mxu0 %v3031_v27 }
0x2ea5   :  { %3033 = vmatprep.subr.bf16.mxu0 %v3189_v1 }
0x2ea8   :  { %3035 = vmatpush3.bf16.msra.mxu0 %v3034_v33 }
0x2ea9   :  { %3036 = vmatprep.subr.bf16.mxu0 %v3189_v1 }
0x2eac   :  { %3038 = vmatpush3.bf16.msra.mxu0 %v3037_v6 }
0x2ead   :  { %3039 = vmatprep.subr.bf16.mxu0 %v3189_v1 }
0x2eb0   :  { %3041 = vmatpush3.bf16.msra.mxu0 %v3040_v13 }
0x2eb3   :  { %2921 = vmatmul.mubr.msk.f32.vlgmr.msra.gmra.mrb[28].mxu0 %vm2339_vm0, %v2338_v53 }
0x2f86   :  { %v2409_v25 = vpop.f32.mrb[28].mxu0 }
0x2f87   :  { %v2922_v11 = vpop.f32.mrb[29].mxu0  ;;  %2932 = vmatmul.mubr.msk.f32.vlgmr.msra.gmra.mrb[20].mxu1 %vm147_vm1, %v2409_v25 }
0x305a   :  { %v2493_v61 = vpop.f32.mrb[20].mxu1 }
0x305b   :  { %v2494_v49 = vadd.f32 %v2596_v31, %v2493_v61  ;;  %v2933_v1 = vpop.f32.mrb[21].mxu1 }
0x305d   :  { %2498 = vst.msk [vmem:[%s4047_s11] sm:$0xff] %vm2497_vm2, %v2494_v49 }

</bundles_post_ra>
